<compile_context>
chip_gen: v7x
topology: tpu7x:2x2x1
jax: 0.10.0
libtpu: 0.0.40
codegen_flags: <defaults>
</compile_context>

<pallas_src>
import jax
import jax.numpy as jnp
from jax.experimental import pallas as pl
from jax.experimental.pallas import tpu as pltpu


def _round_up(x, m):
    return ((x + m - 1) // m) * m


def discriminator_kernel(x_ref, w1_ref, b1_ref, w2_ref, b2_ref, w3_ref, b3_ref,
                         o_ref):
    # x is already bf16 (cast once in the wrapper); no redundant astype here.
    x = x_ref[...]                                            # (TB, D) bf16

    # Layer 1: Linear(D, 512) + LeakyReLU(0.2)  -- bf16 MXU, f32 accumulate.
    h1 = jnp.dot(x, w1_ref[...], preferred_element_type=jnp.float32)
    h1 = h1 + b1_ref[...]
    h1 = jnp.where(h1 > 0, h1, 0.2 * h1).astype(jnp.bfloat16)

    # Layer 2: Linear(512, 256) + LeakyReLU(0.2)
    h2 = jnp.dot(h1, w2_ref[...], preferred_element_type=jnp.float32)
    h2 = h2 + b2_ref[...]
    h2 = jnp.where(h2 > 0, h2, 0.2 * h2)                      # f32 (TB, 256)

    # Layer 3: Linear(256, 1) as VPU multiply + XLU lane reduction (avoids an
    # N=1 MXU pass with a lane-padded weight tile).
    w3 = w3_ref[...].astype(jnp.float32)                      # (1, 256)
    logits = jnp.sum(h2 * w3, axis=-1, keepdims=True) + b3_ref[0, 0]

    # Sigmoid: exp on EUP, approximate reciprocal also on EUP (free slots).
    o_ref[...] = pl.reciprocal(1.0 + jnp.exp(-logits),
                               approx=True).astype(o_ref.dtype)


def discriminator_forward(img, params, *, batch_tile=None):
    """img: [B, C, H, W] float32.  Returns validity [B, 1] float32."""
    w1, b1, w2, b2, w3, b3 = params
    B = img.shape[0]
    D = img.shape[1] * img.shape[2] * img.shape[3]

    # Glue: flatten NCHW row-major (like torch .view) and cast to bf16 once.
    x = img.reshape(B, D).astype(jnp.bfloat16)

    # Batch tile: at least 8 sublanes, at most 256 (MXU rows on v6e/v7x).
    if batch_tile is None:
        batch_tile = min(_round_up(B, 8), 256)
    B_pad = _round_up(B, batch_tile)
    if B_pad != B:
        x = jnp.pad(x, ((0, B_pad - B), (0, 0)))

    grid = (B_pad // batch_tile,)

    x_spec = pl.BlockSpec((batch_tile, D), lambda i: (i, 0))
    out_spec = pl.BlockSpec((batch_tile, 1), lambda i: (i, 0))

    # Constant block index across the batch axis -> weights DMA'd once and
    # held VMEM-resident for all grid steps.
    def resident(a):
        nd = a.ndim
        return pl.BlockSpec(a.shape, lambda i, _nd=nd: (0,) * _nd)

    out = pl.pallas_call(
        discriminator_kernel,
        out_shape=jax.ShapeDtypeStruct((B_pad, 1), jnp.float32),
        grid=grid,
        in_specs=[x_spec, resident(w1), resident(b1), resident(w2),
                  resident(b2), resident(w3), resident(b3)],
        out_specs=out_spec,
        compiler_params=pltpu.CompilerParams(
            dimension_semantics=("parallel",),   # shards across TCs on v7x
            vmem_limit_bytes=16 << 20,           # footprint is ~1.5 MB
        ),
    )(x, w1, b1, w2, b2, w3, b3)

    return out[:B]


def init_params(key, in_dim):
    """Deterministic init.  Weights bf16 [in, out]; biases f32 [1, out].

    w3 is stored as [1, 256] (row vector) since layer 3 is a VPU reduction.
    """
    k1, k2, k3 = jax.random.split(key, 3)

    def lin(k, fan_in, fan_out):
        # PyTorch nn.Linear default: U(-1/sqrt(fan_in), 1/sqrt(fan_in))
        bound = 1.0 / jnp.sqrt(fan_in)
        kw, kb = jax.random.split(k)
        w = jax.random.uniform(kw, (fan_in, fan_out), jnp.float32, -bound, bound)
        b = jax.random.uniform(kb, (1, fan_out), jnp.float32, -bound, bound)
        return w.astype(jnp.bfloat16), b

    w1, b1 = lin(k1, in_dim, 512)
    w2, b2 = lin(k2, 512, 256)
    w3_col, b3 = lin(k3, 256, 1)
    w3 = w3_col.T                      # (1, 256) for the VPU reduction path
    # TODO(synk): optional fp8 (v7x) / int8 (v5e/v6e) quantization of w1 for
    # further weight-streaming reduction is left out to keep bf16 accuracy.
    return (w1, b1, w2, b2, w3, b3)


def _reference(img, params):
    """Pure-JAX f32 reference of the same MLP (bf16 weights upcast)."""
    w1, b1, w2, b2, w3, b3 = params
    x = img.reshape(img.shape[0], -1).astype(jnp.float32)
    h1 = jax.nn.leaky_relu(x @ w1.astype(jnp.float32) + b1, 0.2)
    h2 = jax.nn.leaky_relu(h1 @ w2.astype(jnp.float32) + b2, 0.2)
    logits = h2 @ w3.astype(jnp.float32).T + b3
    return jax.nn.sigmoid(logits)


if __name__ == "__main__":
    key = jax.random.PRNGKey(0)
    k_img, k_par = jax.random.split(key)

    # Small shapes consistent with the module: batch=2, channels=4, img_size=16
    B, C, H, W = 2, 4, 16, 16
    img = jax.random.normal(k_img, (B, C, H, W), jnp.float32)

    params = init_params(k_par, C * H * W)

    out = discriminator_forward(img, params)
    out = jax.block_until_ready(out)

    assert out.shape == (B, 1), out.shape
    assert bool(jnp.all((out >= 0.0) & (out <= 1.0)))

    # Tolerance check vs f32 reference (bf16 matmuls + approx reciprocal).
    ref = _reference(img, params)
    assert bool(jnp.all(jnp.abs(out - ref) < 3e-2)), (out, ref)

    print("KERNEL_OK")
</pallas_src>

<mosaic_0001>
module attributes {stable_mosaic.version = 11 : i64} {
  func.func @discriminator_kernel(%arg0: i32, %arg1: memref<8x1024xbf16, #tpu.memory_space<vmem>>, %arg2: memref<1024x512xbf16, #tpu.memory_space<vmem>>, %arg3: memref<1x512xf32, #tpu.memory_space<vmem>>, %arg4: memref<512x256xbf16, #tpu.memory_space<vmem>>, %arg5: memref<1x256xf32, #tpu.memory_space<vmem>>, %arg6: memref<1x256xbf16, #tpu.memory_space<vmem>>, %arg7: memref<1x1xf32, #tpu.memory_space<vmem>>, %arg8: memref<8x1xf32, #tpu.memory_space<vmem>>) attributes {dimension_semantics = [#tpu.dimension_semantics<parallel>], iteration_bounds = array<i64: 1>, scalar_prefetch = 0 : i64, scratch_operands = 0 : i64, tpu.core_type = #tpu.core_type<tc>, window_params = [{transform_indices = @transform_0, window_bounds = array<i64: 8, 1024>}, {pipeline_mode = #tpu.pipeline_mode<synchronous>, transform_indices = @transform_1, window_bounds = array<i64: 1024, 512>}, {pipeline_mode = #tpu.pipeline_mode<synchronous>, transform_indices = @transform_2, window_bounds = array<i64: 1, 512>}, {pipeline_mode = #tpu.pipeline_mode<synchronous>, transform_indices = @transform_3, window_bounds = array<i64: 512, 256>}, {pipeline_mode = #tpu.pipeline_mode<synchronous>, transform_indices = @transform_4, window_bounds = array<i64: 1, 256>}, {pipeline_mode = #tpu.pipeline_mode<synchronous>, transform_indices = @transform_5, window_bounds = array<i64: 1, 256>}, {pipeline_mode = #tpu.pipeline_mode<synchronous>, transform_indices = @transform_6, window_bounds = array<i64: 1, 1>}, {transform_indices = @transform_7, window_bounds = array<i64: 8, 1>}]} {
    %c0 = arith.constant 0 : index
    %c0_0 = arith.constant 0 : index
    %0 = vector.load %arg1[%c0, %c0_0] : memref<8x1024xbf16, #tpu.memory_space<vmem>>, vector<8x1024xbf16>
    %c0_1 = arith.constant 0 : index
    %c0_2 = arith.constant 0 : index
    %1 = vector.load %arg2[%c0_1, %c0_2] : memref<1024x512xbf16, #tpu.memory_space<vmem>>, vector<1024x512xbf16>
    %cst = arith.constant dense<0.000000e+00> : vector<8x512xf32>
    %2 = tpu.matmul %0, %1, %cst {dimension_numbers = #tpu.dot_dimension_numbers<[1], [0], [0], [1], [0, 0, 1, 1], [], []>} : vector<8x1024xbf16>, vector<1024x512xbf16>, vector<8x512xf32> -> vector<8x512xf32>
    %c0_3 = arith.constant 0 : index
    %c0_4 = arith.constant 0 : index
    %3 = vector.load %arg3[%c0_3, %c0_4] : memref<1x512xf32, #tpu.memory_space<vmem>>, vector<1x512xf32>
    %4 = vector.broadcast %3 : vector<1x512xf32> to vector<8x512xf32>
    %5 = arith.addf %2, %4 : vector<8x512xf32>
    %cst_5 = arith.constant 0.000000e+00 : f32
    %6 = vector.broadcast %cst_5 : f32 to vector<8x512xf32>
    %7 = arith.cmpf ogt, %5, %6 : vector<8x512xf32>
    %cst_6 = arith.constant 2.000000e-01 : f32
    %8 = vector.broadcast %cst_6 : f32 to vector<8x512xf32>
    %9 = arith.mulf %8, %5 : vector<8x512xf32>
    %10 = arith.select %7, %5, %9 : vector<8x512xi1>, vector<8x512xf32>
    %11 = arith.truncf %10 : vector<8x512xf32> to vector<8x512xbf16>
    %c0_7 = arith.constant 0 : index
    %c0_8 = arith.constant 0 : index
    %12 = vector.load %arg4[%c0_7, %c0_8] : memref<512x256xbf16, #tpu.memory_space<vmem>>, vector<512x256xbf16>
    %cst_9 = arith.constant dense<0.000000e+00> : vector<8x256xf32>
    %13 = tpu.matmul %11, %12, %cst_9 {dimension_numbers = #tpu.dot_dimension_numbers<[1], [0], [0], [1], [0, 0, 1, 1], [], []>} : vector<8x512xbf16>, vector<512x256xbf16>, vector<8x256xf32> -> vector<8x256xf32>
    %c0_10 = arith.constant 0 : index
    %c0_11 = arith.constant 0 : index
    %14 = vector.load %arg5[%c0_10, %c0_11] : memref<1x256xf32, #tpu.memory_space<vmem>>, vector<1x256xf32>
    %15 = vector.broadcast %14 : vector<1x256xf32> to vector<8x256xf32>
    %16 = arith.addf %13, %15 : vector<8x256xf32>
    %cst_12 = arith.constant 0.000000e+00 : f32
    %17 = vector.broadcast %cst_12 : f32 to vector<8x256xf32>
    %18 = arith.cmpf ogt, %16, %17 : vector<8x256xf32>
    %cst_13 = arith.constant 2.000000e-01 : f32
    %19 = vector.broadcast %cst_13 : f32 to vector<8x256xf32>
    %20 = arith.mulf %19, %16 : vector<8x256xf32>
    %21 = arith.select %18, %16, %20 : vector<8x256xi1>, vector<8x256xf32>
    %c0_14 = arith.constant 0 : index
    %c0_15 = arith.constant 0 : index
    %22 = vector.load %arg6[%c0_14, %c0_15] : memref<1x256xbf16, #tpu.memory_space<vmem>>, vector<1x256xbf16>
    %23 = arith.extf %22 : vector<1x256xbf16> to vector<1x256xf32>
    %24 = vector.broadcast %23 : vector<1x256xf32> to vector<8x256xf32>
    %25 = arith.mulf %21, %24 : vector<8x256xf32>
    %cst_16 = arith.constant dense<0.000000e+00> : vector<8xf32>
    %26 = vector.multi_reduction <add>, %25, %cst_16 [1] : vector<8x256xf32> to vector<8xf32>
    %27 = vector.shape_cast %26 : vector<8xf32> to vector<8x1xf32>
    %c0_17 = arith.constant 0 : index
    %c0_18 = arith.constant 0 : index
    %28 = vector.load %arg7[%c0_17, %c0_18] : memref<1x1xf32, #tpu.memory_space<vmem>>, vector<1x1xf32>
    %29 = vector.extract %28[0, 0] : f32 from vector<1x1xf32>
    %30 = vector.broadcast %29 : f32 to vector<8x1xf32>
    %31 = arith.addf %27, %30 : vector<8x1xf32>
    %cst_19 = arith.constant 0.000000e+00 : f32
    %32 = vector.broadcast %cst_19 : f32 to vector<8x1xf32>
    %33 = arith.subf %32, %31 : vector<8x1xf32>
    %34 = math.exp %33 : vector<8x1xf32>
    %cst_20 = arith.constant 1.000000e+00 : f32
    %35 = vector.broadcast %cst_20 : f32 to vector<8x1xf32>
    %36 = arith.addf %35, %34 : vector<8x1xf32>
    %37 = tpu.reciprocal %36 {approx = true} : vector<8x1xf32> -> vector<8x1xf32>
    %c0_21 = arith.constant 0 : index
    %c0_22 = arith.constant 0 : index
    %38 = vector.load %arg8[%c0_21, %c0_22] : memref<8x1xf32, #tpu.memory_space<vmem>>, vector<8x1xf32>
    tpu.vector_store %arg8[%c0_21, %c0_22], %37 {strides = array<i32>} : memref<8x1xf32, #tpu.memory_space<vmem>>, vector<8x1xf32>,
    return
  }
  func.func @transform_0(%arg0: i32) -> (i32, i32) {
    %c0_i32 = arith.constant 0 : i32
    %c0_i32_0 = arith.constant 0 : i32
    return %arg0, %c0_i32 : i32, i32
  }
  func.func @transform_1(%arg0: i32) -> (i32, i32) {
    %c0_i32 = arith.constant 0 : i32
    %c0_i32_0 = arith.constant 0 : i32
    %c0_i32_1 = arith.constant 0 : i32
    return %c0_i32, %c0_i32_0 : i32, i32
  }
  func.func @transform_2(%arg0: i32) -> (i32, i32) {
    %c0_i32 = arith.constant 0 : i32
    %c0_i32_0 = arith.constant 0 : i32
    %c0_i32_1 = arith.constant 0 : i32
    return %c0_i32, %c0_i32_0 : i32, i32
  }
  func.func @transform_3(%arg0: i32) -> (i32, i32) {
    %c0_i32 = arith.constant 0 : i32
    %c0_i32_0 = arith.constant 0 : i32
    %c0_i32_1 = arith.constant 0 : i32
    return %c0_i32, %c0_i32_0 : i32, i32
  }
  func.func @transform_4(%arg0: i32) -> (i32, i32) {
    %c0_i32 = arith.constant 0 : i32
    %c0_i32_0 = arith.constant 0 : i32
    %c0_i32_1 = arith.constant 0 : i32
    return %c0_i32, %c0_i32_0 : i32, i32
  }
  func.func @transform_5(%arg0: i32) -> (i32, i32) {
    %c0_i32 = arith.constant 0 : i32
    %c0_i32_0 = arith.constant 0 : i32
    %c0_i32_1 = arith.constant 0 : i32
    return %c0_i32, %c0_i32_0 : i32, i32
  }
  func.func @transform_6(%arg0: i32) -> (i32, i32) {
    %c0_i32 = arith.constant 0 : i32
    %c0_i32_0 = arith.constant 0 : i32
    %c0_i32_1 = arith.constant 0 : i32
    return %c0_i32, %c0_i32_0 : i32, i32
  }
  func.func @transform_7(%arg0: i32) -> (i32, i32) {
    %c0_i32 = arith.constant 0 : i32
    %c0_i32_0 = arith.constant 0 : i32
    return %arg0, %c0_i32 : i32, i32
  }
}

</mosaic_0001>

<bundles_post_ra>
// kernel: tpu_custom_call.1
= control target key start
LH: loop header
LB: loop body
LE: loop exit
PB: predicated region body
PF: predicated region fallthrough
CT: control target
= control target key end

     0   :  { %s3624_s0 = inlined_call_operand.hbm [shape: bf16[8,1024], index: 0, kind: input, shape index: {}]   ;;  %s3625_s1 = inlined_call_operand.hbm [shape: bf16[1024,512], index: 1, kind: input, shape index: {}]   ;;  %s3626_s2 = inlined_call_operand.vmem [shape: f32[1,512], index: 2, kind: input, shape index: {}]   ;;  %s3627_s3 = inlined_call_operand.hbm [shape: bf16[512,256], index: 3, kind: input, shape index: {}]   ;;  %s3628_s4 = inlined_call_operand.vmem [shape: f32[1,256], index: 4, kind: input, shape index: {}]   ;;  %s3629_s5 = inlined_call_operand.vmem [shape: bf16[1,256], index: 5, kind: input, shape index: {}]   ;;  %s3630_s6 = inlined_call_operand.<no memory space> [shape: f32[1,1], index: 6, kind: input, shape index: {}]   ;;  %s3631_s7 = inlined_call_operand.vmem [shape: f32[8,1], index: 7, kind: output, shape index: {}]  }
   0x1   :  { %v12_v0 = vstv %s3630_s6 }
   0x2   :  { %13 = vst [vmem:[#allocation2] sm:$0x1] %v12_v0 }
   0x3   :  { %14 = vsyncpa [#allocation4], 0 }
   0x4   :  { %15 = vsyncpa [#allocation6], 0  ;;  %s3459_s26 = smov [#allocation5]   ;;  %s3389_s30 = scalar_lea.hbm %s3625_s1, 32768 }
   0x5   :  { %s31_s27 = sshll.u32 %s3459_s26, 4  ;;  %p3390_p0 = scmp.ne.s32.totalorder %s3625_s1, %s3389_s30  ;;  %s32_s27 = int_to_ptr.vmem [resolvable:$true] %s31_s27 }
   0x6   :  { %p3393_p1 = scmp.lt.u32.totalorder %s3389_s30, %s3625_s1 }
   0x8   :  { %p3395_p2 = pnand %p3393_p1, %p3390_p0 }
   0xa   :  { %3398 = shalt.err (!%p3395_p2)
}
   0xb   :  { %s3399_s6 = scalar_lea.vmem %s32_s27, 32768  ;;  %p3404_p4 = scmp.lt.s32.totalorder %s32_s27, %s32_s27 }
   0xc   :  { %p3400_p3 = scmp.ne.s32.totalorder %s32_s27, %s3399_s6  ;;  %p3405_p5 = scmp.lt.s32.totalorder %s3399_s6, %s3399_s6 }
   0xe   :  { %p3406_p6 = por %p3405_p5, %p3404_p4 }
  0x10   :  { %p3407_p7 = pnand %p3406_p6, %p3400_p3 }
  0x12   :  { %3410 = shalt.err (!%p3407_p7)
}
  0x13   :  { %s3460_s12 = smov 256   ;;  %s3461_s13 = smov 16  }
  0x14   :  { %37 = dma.hbm_to_vmem [thread:$0]  %s3625_s1, 32768, %s32_s27, [#allocation6], %s3460_s12, %s3460_s12, %s3461_s13  }
  0x15   :  { %s3462_s16 = smov [#allocation3]   ;;  %s3463_s18 = smov [#allocation7]  }
  0x16   :  { %s22_s17 = sshll.u32 %s3462_s16, 4  ;;  %s45_s19 = sshll.u32 %s3463_s18, 4  ;;  %s23_s17 = int_to_ptr.vmem [resolvable:$true] %s22_s17  ;;  %s46_s19 = int_to_ptr.vmem [resolvable:$true] %s45_s19 }
  0x17   :  { %s3411_s22 = scalar_lea.hbm %s3624_s0, 512 }
  0x18   :  { %p3412_p8 = scmp.ne.s32.totalorder %s3624_s0, %s3411_s22  ;;  %p3415_p9 = scmp.lt.u32.totalorder %s3411_s22, %s3624_s0 }
  0x1a   :  { %p3417_p10 = pnand %p3415_p9, %p3412_p8 }
  0x1c   :  { %3420 = shalt.err (!%p3417_p10)
}
  0x1d   :  { %s3421_s1 = scalar_lea.vmem %s23_s17, 512  ;;  %p3426_p12 = scmp.lt.s32.totalorder %s23_s17, %s23_s17 }
  0x1e   :  { %p3422_p11 = scmp.ne.s32.totalorder %s23_s17, %s3421_s1  ;;  %p3427_p13 = scmp.lt.s32.totalorder %s3421_s1, %s3421_s1 }
  0x20   :  { %p3428_p0 = por %p3427_p13, %p3426_p12 }
  0x22   :  { %p3429_p1 = pnand %p3428_p0, %p3422_p11 }
  0x24   :  { %3432 = shalt.err (!%p3429_p1)
}
  0x25   :  { %25 = dma.hbm_to_vmem [thread:$0]  %s3624_s0, 512, %s23_s17, [#allocation4]  }
  0x26   :  { %s3433_s8 = scalar_lea.hbm %s3627_s3, 8192 }
  0x27   :  { %p3434_p2 = scmp.ne.s32.totalorder %s3627_s3, %s3433_s8  ;;  %p3437_p3 = scmp.lt.u32.totalorder %s3433_s8, %s3627_s3 }
  0x29   :  { %p3439_p4 = pnand %p3437_p3, %p3434_p2 }
  0x2b   :  { %3442 = shalt.err (!%p3439_p4)
}
  0x2c   :  { %s3443_s12 = scalar_lea.vmem %s46_s19, 8192  ;;  %p3448_p6 = scmp.lt.s32.totalorder %s46_s19, %s46_s19 }
  0x2d   :  { %p3444_p5 = scmp.ne.s32.totalorder %s46_s19, %s3443_s12  ;;  %p3449_p7 = scmp.lt.s32.totalorder %s3443_s12, %s3443_s12 }
  0x2f   :  { %p3450_p8 = por %p3449_p7, %p3448_p6 }
  0x31   :  { %p3451_p9 = pnand %p3450_p8, %p3444_p5 }
  0x33   :  { %3454 = shalt.err (!%p3451_p9)
}
  0x34   :  { %s3464_s0 = smov 128   ;;  %s3465_s13 = smov 8  }
  0x35   :  { %51 = dma.hbm_to_vmem [thread:$0]  %s3627_s3, 8192, %s46_s19, [#allocation6], %s3464_s0, %s3464_s0, %s3465_s13  }
  0x36   :  { %3455 = dma.done.wait [#allocation4], 512  }
  0x37   :  { %3456 = vsyncadd [#allocation4], 4294966784 }
  0x38   :  { %3457 = dma.done.wait [#allocation6], 40960  }
  0x39   :  { %3458 = vsyncadd [#allocation6], 4294926336  ;;  %v2897_v1 = vld [vmem:[#allocation5 + $0x4] ss:$16 sps:$4 sm:$0xff]   ;;  %v2901_v3 = vld [vmem:[#allocation5] ss:$16 sps:$4 sm:$0xff]  }
  0x3a   :  { %v2899_v2 = vld [vmem:[#allocation5 + $0x204] ss:$16 sps:$4 sm:$0xff]   ;;  %1657 = vmatprep.subr.bf16.mxu1 %v2897_v1  ;;  %v2902_v4 = vld [vmem:[#allocation5 + $0x200] ss:$16 sps:$4 sm:$0xff]   ;;  %v68_v49 = vld [vmem:[#allocation3 + $0x8] sm:$0xff]  ;;  %vm2520_vm6 = vcmask 7168  }
  0x3b   :  { %1698 = vmatprep.subr.bf16.mxu0 %v2899_v2  ;;  %v2903_v5 = vld [vmem:[#allocation5 + $0x24] ss:$16 sps:$4 sm:$0xff]   ;;  %1658 = vmatpush1.bf16.msra.mxu1 %v2901_v3  ;;  %v2907_v7 = vld [vmem:[#allocation5 + $0x20] ss:$16 sps:$4 sm:$0xff]   ;;  %v3547_v52 = vcombine.high %v68_v49, %v68_v49 }
  0x3c   :  { %1699 = vmatpush1.bf16.msra.mxu0 %v2902_v4  ;;  %v2905_v6 = vld [vmem:[#allocation5 + $0x224] ss:$16 sps:$4 sm:$0xff]   ;;  %1659 = vmatprep.subr.bf16.mxu1 %v2903_v5  ;;  %v2908_v8 = vld [vmem:[#allocation5 + $0x220] ss:$16 sps:$4 sm:$0xff]  }
  0x3d   :  { %1700 = vmatprep.subr.bf16.mxu0 %v2905_v6  ;;  %v2909_v9 = vld [vmem:[#allocation5 + $0x44] ss:$16 sps:$4 sm:$0xff]   ;;  %v2913_v11 = vld [vmem:[#allocation5 + $0x40] ss:$16 sps:$4 sm:$0xff]   ;;  %1730 = vmatprep.mubr.bf16.mxu0 %v3547_v52  ;;  %v3002_v6 = vld [vmem:[#allocation5 + $0xc] ss:$16 sps:$4 sm:$0xff]  }
  0x3e   :  { %v2911_v10 = vld [vmem:[#allocation5 + $0x244] ss:$16 sps:$4 sm:$0xff]   ;;  %v2914_v12 = vld [vmem:[#allocation5 + $0x240] ss:$16 sps:$4 sm:$0xff]  }
  0x3f   :  { %1660 = vmatpush1.bf16.msra.mxu1 %v2907_v7  ;;  %v2915_v13 = vld [vmem:[#allocation5 + $0x64] ss:$16 sps:$4 sm:$0xff]   ;;  %v2919_v15 = vld [vmem:[#allocation5 + $0x60] ss:$16 sps:$4 sm:$0xff]  }
  0x40   :  { %1701 = vmatpush1.bf16.msra.mxu0 %v2908_v8  ;;  %1661 = vmatprep.subr.bf16.mxu1 %v2909_v9  ;;  %v2917_v14 = vld [vmem:[#allocation5 + $0x264] ss:$16 sps:$4 sm:$0xff]   ;;  %v2920_v16 = vld [vmem:[#allocation5 + $0x260] ss:$16 sps:$4 sm:$0xff]   ;;  %v3553_v8 = vcombine.low %v68_v49, %v68_v49 }
  0x41   :  { %1702 = vmatprep.subr.bf16.mxu0 %v2911_v10  ;;  %v2921_v17 = vld [vmem:[#allocation5 + $0x84] ss:$16 sps:$4 sm:$0xff]   ;;  %v2925_v19 = vld [vmem:[#allocation5 + $0x80] ss:$16 sps:$4 sm:$0xff]   ;;  %v3000_v10 = vld [vmem:[#allocation5 + $0x8] ss:$16 sps:$4 sm:$0xff]  }
  0x42   :  { %v2923_v18 = vld [vmem:[#allocation5 + $0x284] ss:$16 sps:$4 sm:$0xff]   ;;  %v2926_v20 = vld [vmem:[#allocation5 + $0x280] ss:$16 sps:$4 sm:$0xff]  }
  0x43   :  { %1662 = vmatpush1.bf16.msra.mxu1 %v2913_v11  ;;  %v2927_v21 = vld [vmem:[#allocation5 + $0xa4] ss:$16 sps:$4 sm:$0xff]   ;;  %v2931_v23 = vld [vmem:[#allocation5 + $0xa0] ss:$16 sps:$4 sm:$0xff]  }
  0x44   :  { %1703 = vmatpush1.bf16.msra.mxu0 %v2914_v12  ;;  %1663 = vmatprep.subr.bf16.mxu1 %v2915_v13  ;;  %v2929_v22 = vld [vmem:[#allocation5 + $0x2a4] ss:$16 sps:$4 sm:$0xff]   ;;  %v2932_v24 = vld [vmem:[#allocation5 + $0x2a0] ss:$16 sps:$4 sm:$0xff]   ;;  %v3008_v12 = vld [vmem:[#allocation5 + $0x2c] ss:$16 sps:$4 sm:$0xff]  }
  0x45   :  { %1704 = vmatprep.subr.bf16.mxu0 %v2917_v14  ;;  %v2933_v25 = vld [vmem:[#allocation5 + $0xc4] ss:$16 sps:$4 sm:$0xff]   ;;  %v2937_v27 = vld [vmem:[#allocation5 + $0xc0] ss:$16 sps:$4 sm:$0xff]   ;;  %v3006_v14 = vld [vmem:[#allocation5 + $0x28] ss:$16 sps:$4 sm:$0xff]  }
  0x46   :  { %v2935_v26 = vld [vmem:[#allocation5 + $0x2c4] ss:$16 sps:$4 sm:$0xff]   ;;  %v2938_v28 = vld [vmem:[#allocation5 + $0x2c0] ss:$16 sps:$4 sm:$0xff]  }
  0x47   :  { %1664 = vmatpush1.bf16.msra.mxu1 %v2919_v15  ;;  %v2939_v29 = vld [vmem:[#allocation5 + $0xe4] ss:$16 sps:$4 sm:$0xff]   ;;  %v2943_v31 = vld [vmem:[#allocation5 + $0xe0] ss:$16 sps:$4 sm:$0xff]  }
  0x48   :  { %1705 = vmatpush1.bf16.msra.mxu0 %v2920_v16  ;;  %1665 = vmatprep.subr.bf16.mxu1 %v2921_v17  ;;  %v2941_v30 = vld [vmem:[#allocation5 + $0x2e4] ss:$16 sps:$4 sm:$0xff]   ;;  %v2944_v32 = vld [vmem:[#allocation5 + $0x2e0] ss:$16 sps:$4 sm:$0xff]   ;;  %v3014_v16 = vld [vmem:[#allocation5 + $0x4c] ss:$16 sps:$4 sm:$0xff]  }
  0x49   :  { %1706 = vmatprep.subr.bf16.mxu0 %v2923_v18  ;;  %v2945_v33 = vld [vmem:[#allocation5 + $0x104] ss:$16 sps:$4 sm:$0xff]   ;;  %v2949_v35 = vld [vmem:[#allocation5 + $0x100] ss:$16 sps:$4 sm:$0xff]   ;;  %v3012_v18 = vld [vmem:[#allocation5 + $0x48] ss:$16 sps:$4 sm:$0xff]  }
  0x4a   :  { %v2947_v34 = vld [vmem:[#allocation5 + $0x304] ss:$16 sps:$4 sm:$0xff]   ;;  %v2950_v36 = vld [vmem:[#allocation5 + $0x300] ss:$16 sps:$4 sm:$0xff]  }
  0x4b   :  { %1666 = vmatpush1.bf16.msra.mxu1 %v2925_v19  ;;  %v2951_v37 = vld [vmem:[#allocation5 + $0x124] ss:$16 sps:$4 sm:$0xff]   ;;  %v2955_v39 = vld [vmem:[#allocation5 + $0x120] ss:$16 sps:$4 sm:$0xff]  }
  0x4c   :  { %1707 = vmatpush1.bf16.msra.mxu0 %v2926_v20  ;;  %1667 = vmatprep.subr.bf16.mxu1 %v2927_v21  ;;  %v2953_v38 = vld [vmem:[#allocation5 + $0x324] ss:$16 sps:$4 sm:$0xff]   ;;  %v2956_v40 = vld [vmem:[#allocation5 + $0x320] ss:$16 sps:$4 sm:$0xff]   ;;  %v3020_v20 = vld [vmem:[#allocation5 + $0x6c] ss:$16 sps:$4 sm:$0xff]  }
  0x4d   :  { %1708 = vmatprep.subr.bf16.mxu0 %v2929_v22  ;;  %v2957_v41 = vld [vmem:[#allocation5 + $0x144] ss:$16 sps:$4 sm:$0xff]   ;;  %v2961_v43 = vld [vmem:[#allocation5 + $0x140] ss:$16 sps:$4 sm:$0xff]   ;;  %v3018_v22 = vld [vmem:[#allocation5 + $0x68] ss:$16 sps:$4 sm:$0xff]  }
  0x4e   :  { %v2959_v42 = vld [vmem:[#allocation5 + $0x344] ss:$16 sps:$4 sm:$0xff]   ;;  %v2962_v44 = vld [vmem:[#allocation5 + $0x340] ss:$16 sps:$4 sm:$0xff]  }
  0x4f   :  { %1668 = vmatpush1.bf16.msra.mxu1 %v2931_v23  ;;  %v2963_v45 = vld [vmem:[#allocation5 + $0x164] ss:$16 sps:$4 sm:$0xff]   ;;  %v2967_v50 = vld [vmem:[#allocation5 + $0x160] ss:$16 sps:$4 sm:$0xff]  }
  0x50   :  { %1709 = vmatpush1.bf16.msra.mxu0 %v2932_v24  ;;  %1669 = vmatprep.subr.bf16.mxu1 %v2933_v25  ;;  %v2965_v46 = vld [vmem:[#allocation5 + $0x364] ss:$16 sps:$4 sm:$0xff]   ;;  %v2968_v51 = vld [vmem:[#allocation5 + $0x360] ss:$16 sps:$4 sm:$0xff]   ;;  %v3026_v24 = vld [vmem:[#allocation5 + $0x8c] ss:$16 sps:$4 sm:$0xff]  }
  0x51   :  { %1710 = vmatprep.subr.bf16.mxu0 %v2935_v26  ;;  %v67_v47 = vld [vmem:[#allocation3] sm:$0xff]  ;;  %v3024_v26 = vld [vmem:[#allocation5 + $0x88] ss:$16 sps:$4 sm:$0xff]  }
  0x52   :  { %v3545_v48 = vcombine.high %v67_v47, %v67_v47  ;;  %v2969_v53 = vld [vmem:[#allocation5 + $0x184] ss:$16 sps:$4 sm:$0xff]   ;;  %v2973_v55 = vld [vmem:[#allocation5 + $0x180] ss:$16 sps:$4 sm:$0xff]   ;;  %v3551_v7 = vcombine.low %v67_v47, %v67_v47 }
  0x53   :  { %1670 = vmatpush1.bf16.msra.mxu1 %v2937_v27  ;;  %v2971_v54 = vld [vmem:[#allocation5 + $0x384] ss:$16 sps:$4 sm:$0xff]   ;;  %v2974_v56 = vld [vmem:[#allocation5 + $0x380] ss:$16 sps:$4 sm:$0xff]  }
  0x54   :  { %1711 = vmatpush1.bf16.msra.mxu0 %v2938_v28  ;;  %1671 = vmatprep.subr.bf16.mxu1 %v2939_v29  ;;  %v2975_v57 = vld [vmem:[#allocation5 + $0x1a4] ss:$16 sps:$4 sm:$0xff]   ;;  %v2979_v59 = vld [vmem:[#allocation5 + $0x1a0] ss:$16 sps:$4 sm:$0xff]   ;;  %v3032_v28 = vld [vmem:[#allocation5 + $0xac] ss:$16 sps:$4 sm:$0xff]  }
  0x55   :  { %1712 = vmatprep.subr.bf16.mxu0 %v2941_v30  ;;  %1689 = vmatprep.mubr.bf16.mxu1 %v3545_v48  ;;  %v2977_v58 = vld [vmem:[#allocation5 + $0x3a4] ss:$16 sps:$4 sm:$0xff]   ;;  %v2980_v60 = vld [vmem:[#allocation5 + $0x3a0] ss:$16 sps:$4 sm:$0xff]   ;;  %v3030_v30 = vld [vmem:[#allocation5 + $0xa8] ss:$16 sps:$4 sm:$0xff]  }
  0x56   :  { %v2981_v61 = vld [vmem:[#allocation5 + $0x1c4] ss:$16 sps:$4 sm:$0xff]   ;;  %v2985_v63 = vld [vmem:[#allocation5 + $0x1c0] ss:$16 sps:$4 sm:$0xff]  }
  0x57   :  { %1672 = vmatpush1.bf16.msra.mxu1 %v2943_v31  ;;  %v2983_v62 = vld [vmem:[#allocation5 + $0x3c4] ss:$16 sps:$4 sm:$0xff]   ;;  %v2986_v0 = vld [vmem:[#allocation5 + $0x3c0] ss:$16 sps:$4 sm:$0xff]  }
  0x58   :  { %1713 = vmatpush1.bf16.msra.mxu0 %v2944_v32  ;;  %1673 = vmatprep.subr.bf16.mxu1 %v2945_v33  ;;  %v2987_v1 = vld [vmem:[#allocation5 + $0x1e4] ss:$16 sps:$4 sm:$0xff]   ;;  %v2991_v3 = vld [vmem:[#allocation5 + $0x1e0] ss:$16 sps:$4 sm:$0xff]   ;;  %v3038_v32 = vld [vmem:[#allocation5 + $0xcc] ss:$16 sps:$4 sm:$0xff]  }
  0x59   :  { %1714 = vmatprep.subr.bf16.mxu0 %v2947_v34  ;;  %v2989_v2 = vld [vmem:[#allocation5 + $0x3e4] ss:$16 sps:$4 sm:$0xff]   ;;  %v2992_v4 = vld [vmem:[#allocation5 + $0x3e0] ss:$16 sps:$4 sm:$0xff]  }
  0x5a   :  { %v2999_v5 = vld [vmem:[#allocation5 + $0x404] ss:$16 sps:$4 sm:$0xff]   ;;  %v2997_v9 = vld [vmem:[#allocation5 + $0x400] ss:$16 sps:$4 sm:$0xff]  }
  0x5b   :  { %1674 = vmatpush1.bf16.msra.mxu1 %v2949_v35  ;;  %v3005_v11 = vld [vmem:[#allocation5 + $0x424] ss:$16 sps:$4 sm:$0xff]   ;;  %v3003_v13 = vld [vmem:[#allocation5 + $0x420] ss:$16 sps:$4 sm:$0xff]  }
  0x5c   :  { %1715 = vmatpush1.bf16.msra.mxu0 %v2950_v36  ;;  %1675 = vmatprep.subr.bf16.mxu1 %v2951_v37  ;;  %v3011_v15 = vld [vmem:[#allocation5 + $0x444] ss:$16 sps:$4 sm:$0xff]   ;;  %v3009_v17 = vld [vmem:[#allocation5 + $0x440] ss:$16 sps:$4 sm:$0xff]   ;;  %v3036_v36 = vld [vmem:[#allocation5 + $0xc8] ss:$16 sps:$4 sm:$0xff]  }
  0x5d   :  { %1716 = vmatprep.subr.bf16.mxu0 %v2953_v38  ;;  %v3017_v19 = vld [vmem:[#allocation5 + $0x464] ss:$16 sps:$4 sm:$0xff]   ;;  %v3015_v21 = vld [vmem:[#allocation5 + $0x460] ss:$16 sps:$4 sm:$0xff]   ;;  %v3044_v38 = vld [vmem:[#allocation5 + $0xec] ss:$16 sps:$4 sm:$0xff]  }
  0x5e   :  { %v3023_v23 = vld [vmem:[#allocation5 + $0x484] ss:$16 sps:$4 sm:$0xff]   ;;  %v3021_v25 = vld [vmem:[#allocation5 + $0x480] ss:$16 sps:$4 sm:$0xff]  }
  0x5f   :  { %1676 = vmatpush1.bf16.msra.mxu1 %v2955_v39  ;;  %v3029_v27 = vld [vmem:[#allocation5 + $0x4a4] ss:$16 sps:$4 sm:$0xff]   ;;  %v3027_v29 = vld [vmem:[#allocation5 + $0x4a0] ss:$16 sps:$4 sm:$0xff]  }
  0x60   :  { %1717 = vmatpush1.bf16.msra.mxu0 %v2956_v40  ;;  %1677 = vmatprep.subr.bf16.mxu1 %v2957_v41  ;;  %v3035_v31 = vld [vmem:[#allocation5 + $0x4c4] ss:$16 sps:$4 sm:$0xff]   ;;  %v3033_v34 = vld [vmem:[#allocation5 + $0x4c0] ss:$16 sps:$4 sm:$0xff]   ;;  %v3042_v40 = vld [vmem:[#allocation5 + $0xe8] ss:$16 sps:$4 sm:$0xff]  }
  0x61   :  { %1718 = vmatprep.subr.bf16.mxu0 %v2959_v42  ;;  %v3558_v33 = vld [vmem:[#allocation3 + $0x10] sm:$0xff]  ;;  %v3050_v42 = vld [vmem:[#allocation5 + $0x10c] ss:$16 sps:$4 sm:$0xff]  }
  0x62   :  { %v3562_v35 = vcombine.high %v3558_v33, %v3558_v33  ;;  %v3041_v37 = vld [vmem:[#allocation5 + $0x4e4] ss:$16 sps:$4 sm:$0xff]   ;;  %v3039_v39 = vld [vmem:[#allocation5 + $0x4e0] ss:$16 sps:$4 sm:$0xff]  }
  0x63   :  { %1678 = vmatpush1.bf16.msra.mxu1 %v2961_v43  ;;  %v3047_v41 = vld [vmem:[#allocation5 + $0x504] ss:$16 sps:$4 sm:$0xff]   ;;  %v3045_v43 = vld [vmem:[#allocation5 + $0x500] ss:$16 sps:$4 sm:$0xff]  }
  0x64   :  { %1719 = vmatpush1.bf16.msra.mxu0 %v2962_v44  ;;  %1679 = vmatprep.subr.bf16.mxu1 %v2963_v45  ;;  %v3048_v44 = vld [vmem:[#allocation5 + $0x108] ss:$16 sps:$4 sm:$0xff]   ;;  %v3053_v45 = vld [vmem:[#allocation5 + $0x524] ss:$16 sps:$4 sm:$0xff]   ;;  %v3051_v47 = vld [vmem:[#allocation5 + $0x520] ss:$16 sps:$4 sm:$0xff]  }
  0x65   :  { %1720 = vmatprep.subr.bf16.mxu0 %v2965_v46  ;;  %v3056_v46 = vld [vmem:[#allocation5 + $0x12c] ss:$16 sps:$4 sm:$0xff]   ;;  %v3059_v49 = vld [vmem:[#allocation5 + $0x544] ss:$16 sps:$4 sm:$0xff]  }
  0x67   :  { %1680 = vmatpush1.bf16.msra.mxu1 %v2967_v50  ;;  %v3062_v50 = vld [vmem:[#allocation5 + $0x14c] ss:$16 sps:$4 sm:$0xff]  }
  0x68   :  { %1721 = vmatpush1.bf16.msra.mxu0 %v2968_v51  ;;  %1681 = vmatprep.subr.bf16.mxu1 %v2969_v53  ;;  %v3057_v51 = vld [vmem:[#allocation5 + $0x540] ss:$16 sps:$4 sm:$0xff]   ;;  %v3060_v53 = vld [vmem:[#allocation5 + $0x148] ss:$16 sps:$4 sm:$0xff]  }
  0x69   :  { %1722 = vmatprep.subr.bf16.mxu0 %v2971_v54  ;;  %v3065_v54 = vld [vmem:[#allocation5 + $0x564] ss:$16 sps:$4 sm:$0xff]  }
  0x6b   :  { %1682 = vmatpush1.bf16.msra.mxu1 %v2973_v55  ;;  %v3068_v55 = vld [vmem:[#allocation5 + $0x16c] ss:$16 sps:$4 sm:$0xff]  }
  0x6c   :  { %1723 = vmatpush1.bf16.msra.mxu0 %v2974_v56  ;;  %1683 = vmatprep.subr.bf16.mxu1 %v2975_v57  ;;  %v3063_v56 = vld [vmem:[#allocation5 + $0x560] ss:$16 sps:$4 sm:$0xff]   ;;  %v3066_v57 = vld [vmem:[#allocation5 + $0x168] ss:$16 sps:$4 sm:$0xff]  }
  0x6d   :  { %1724 = vmatprep.subr.bf16.mxu0 %v2977_v58  ;;  %v3071_v58 = vld [vmem:[#allocation5 + $0x584] ss:$16 sps:$4 sm:$0xff]  }
  0x6f   :  { %1684 = vmatpush1.bf16.msra.mxu1 %v2979_v59  ;;  %v3074_v59 = vld [vmem:[#allocation5 + $0x18c] ss:$16 sps:$4 sm:$0xff]  }
  0x70   :  { %1725 = vmatpush1.bf16.msra.mxu0 %v2980_v60  ;;  %1685 = vmatprep.subr.bf16.mxu1 %v2981_v61  ;;  %v3069_v60 = vld [vmem:[#allocation5 + $0x580] ss:$16 sps:$4 sm:$0xff]   ;;  %v3072_v61 = vld [vmem:[#allocation5 + $0x188] ss:$16 sps:$4 sm:$0xff]  }
  0x71   :  { %1726 = vmatprep.subr.bf16.mxu0 %v2983_v62  ;;  %v3077_v62 = vld [vmem:[#allocation5 + $0x5a4] ss:$16 sps:$4 sm:$0xff]  }
  0x73   :  { %1686 = vmatpush1.bf16.msra.mxu1 %v2985_v63  ;;  %v3080_v63 = vld [vmem:[#allocation5 + $0x1ac] ss:$16 sps:$4 sm:$0xff]  }
  0x74   :  { %1727 = vmatpush1.bf16.msra.mxu0 %v2986_v0  ;;  %1687 = vmatprep.subr.bf16.mxu1 %v2987_v1  ;;  %v3075_v0 = vld [vmem:[#allocation5 + $0x5a0] ss:$16 sps:$4 sm:$0xff]   ;;  %v3078_v1 = vld [vmem:[#allocation5 + $0x1a8] ss:$16 sps:$4 sm:$0xff]  }
  0x75   :  { %1728 = vmatprep.subr.bf16.mxu0 %v2989_v2  ;;  %v3083_v2 = vld [vmem:[#allocation5 + $0x5c4] ss:$16 sps:$4 sm:$0xff]  }
  0x77   :  { %1688 = vmatpush1.bf16.msra.mxu1 %v2991_v3  ;;  %v3086_v3 = vld [vmem:[#allocation5 + $0x1cc] ss:$16 sps:$4 sm:$0xff]  }
  0x78   :  { %1729 = vmatpush1.bf16.msra.mxu0 %v2992_v4  ;;  %1821 = vmatprep.subr.bf16.mxu1 %v3002_v6  ;;  %v3081_v4 = vld [vmem:[#allocation5 + $0x5c0] ss:$16 sps:$4 sm:$0xff]   ;;  %v3089_v6 = vld [vmem:[#allocation5 + $0x5e4] ss:$16 sps:$4 sm:$0xff]  }
  0x79   :  { %1739 = vmatprep.subr.bf16.mxu0 %v2999_v5  ;;  %v3084_v5 = vld [vmem:[#allocation5 + $0x1c8] ss:$16 sps:$4 sm:$0xff]  }
  0x7a   :  { %1690 = vmatmul.mubr.bf16.vlgmr.msra.gmra.mrb[0].mxu1 %v3551_v7 }
  0x7b   :  { %1731 = vmatmul.mubr.bf16.vlgmr.msra.gmra.mrb[0].mxu0 %v3553_v8  ;;  %1822 = vmatpush1.bf16.msra.mxu1 %v3000_v10  ;;  %v3087_v10 = vld [vmem:[#allocation5 + $0x5e0] ss:$16 sps:$4 sm:$0xff]  }
  0x7c   :  { %1740 = vmatpush1.bf16.msra.mxu0 %v2997_v9  ;;  %1823 = vmatprep.subr.bf16.mxu1 %v3008_v12  ;;  %v3092_v9 = vld [vmem:[#allocation5 + $0x1ec] ss:$16 sps:$4 sm:$0xff]   ;;  %v3097_v12 = vld [vmem:[#allocation5 + $0x604] ss:$16 sps:$4 sm:$0xff]  }
  0x7d   :  { %1741 = vmatprep.subr.bf16.mxu0 %v3005_v11  ;;  %1853 = vmatprep.mubr.bf16.mxu1 %v3545_v48  ;;  %v3054_v48 = vld [vmem:[#allocation5 + $0x128] ss:$16 sps:$4 sm:$0xff]  }
  0x7e   :  { %1771 = vmatprep.mubr.bf16.mxu0 %v3562_v35  ;;  %v3090_v11 = vld [vmem:[#allocation5 + $0x1e8] ss:$16 sps:$4 sm:$0xff]  }
  0x7f   :  { %1824 = vmatpush1.bf16.msra.mxu1 %v3006_v14  ;;  %v3567_v14 = vcombine.low %v3558_v33, %v3558_v33  ;;  %v3122_v33 = vld [vmem:[#allocation5 + $0x288] ss:$16 sps:$4 sm:$0xff]  }
  0x80   :  { %1742 = vmatpush1.bf16.msra.mxu0 %v3003_v13  ;;  %1825 = vmatprep.subr.bf16.mxu1 %v3014_v16  ;;  %v3100_v13 = vld [vmem:[#allocation5 + $0x20c] ss:$16 sps:$4 sm:$0xff]   ;;  %v3098_v16 = vld [vmem:[#allocation5 + $0x208] ss:$16 sps:$4 sm:$0xff]  }
  0x81   :  { %1743 = vmatprep.subr.bf16.mxu0 %v3011_v15  ;;  %v3095_v15 = vld [vmem:[#allocation5 + $0x600] ss:$16 sps:$4 sm:$0xff]  }
  0x83   :  { %1826 = vmatpush1.bf16.msra.mxu1 %v3012_v18  ;;  %v3106_v18 = vld [vmem:[#allocation5 + $0x22c] ss:$16 sps:$4 sm:$0xff]  }
  0x84   :  { %1744 = vmatpush1.bf16.msra.mxu0 %v3009_v17  ;;  %1827 = vmatprep.subr.bf16.mxu1 %v3020_v20  ;;  %v3103_v17 = vld [vmem:[#allocation5 + $0x624] ss:$16 sps:$4 sm:$0xff]  }
  0x85   :  { %1745 = vmatprep.subr.bf16.mxu0 %v3017_v19  ;;  %v3569_v19 = vld [vmem:[#allocation3 + $0x18] sm:$0xff] }
  0x86   :  { %v3573_v20 = vcombine.high %v3569_v19, %v3569_v19 }
  0x87   :  { %1828 = vmatpush1.bf16.msra.mxu1 %v3018_v22  ;;  %v3104_v22 = vld [vmem:[#allocation5 + $0x228] ss:$16 sps:$4 sm:$0xff]  }
  0x88   :  { %1746 = vmatpush1.bf16.msra.mxu0 %v3015_v21  ;;  %1829 = vmatprep.subr.bf16.mxu1 %v3026_v24  ;;  %v3101_v21 = vld [vmem:[#allocation5 + $0x620] ss:$16 sps:$4 sm:$0xff]   ;;  %v3112_v24 = vld [vmem:[#allocation5 + $0x24c] ss:$16 sps:$4 sm:$0xff]  }
  0x89   :  { %1747 = vmatprep.subr.bf16.mxu0 %v3023_v23  ;;  %v3109_v23 = vld [vmem:[#allocation5 + $0x644] ss:$16 sps:$4 sm:$0xff]  }
  0x8b   :  { %1830 = vmatpush1.bf16.msra.mxu1 %v3024_v26  ;;  %v3110_v26 = vld [vmem:[#allocation5 + $0x248] ss:$16 sps:$4 sm:$0xff]  }
  0x8c   :  { %1748 = vmatpush1.bf16.msra.mxu0 %v3021_v25  ;;  %1831 = vmatprep.subr.bf16.mxu1 %v3032_v28  ;;  %v3107_v25 = vld [vmem:[#allocation5 + $0x640] ss:$16 sps:$4 sm:$0xff]  }
  0x8d   :  { %1749 = vmatprep.subr.bf16.mxu0 %v3029_v27  ;;  %v3115_v27 = vld [vmem:[#allocation5 + $0x664] ss:$16 sps:$4 sm:$0xff]   ;;  %v3113_v28 = vld [vmem:[#allocation5 + $0x660] ss:$16 sps:$4 sm:$0xff]  }
  0x8f   :  { %1832 = vmatpush1.bf16.msra.mxu1 %v3030_v30  ;;  %v3121_v30 = vld [vmem:[#allocation5 + $0x684] ss:$16 sps:$4 sm:$0xff]  }
  0x90   :  { %1750 = vmatpush1.bf16.msra.mxu0 %v3027_v29  ;;  %1833 = vmatprep.subr.bf16.mxu1 %v3038_v32  ;;  %v3116_v29 = vld [vmem:[#allocation5 + $0x268] ss:$16 sps:$4 sm:$0xff]   ;;  %v3119_v32 = vld [vmem:[#allocation5 + $0x680] ss:$16 sps:$4 sm:$0xff]  }
  0x91   :  { %1751 = vmatprep.subr.bf16.mxu0 %v3035_v31  ;;  %v3124_v31 = vld [vmem:[#allocation5 + $0x28c] ss:$16 sps:$4 sm:$0xff]  }
  0x93   :  { %1834 = vmatpush1.bf16.msra.mxu1 %v3036_v36  ;;  %v3125_v36 = vld [vmem:[#allocation5 + $0x6a0] ss:$16 sps:$4 sm:$0xff]  }
  0x94   :  { %1752 = vmatpush1.bf16.msra.mxu0 %v3033_v34  ;;  %1835 = vmatprep.subr.bf16.mxu1 %v3044_v38  ;;  %v3130_v34 = vld [vmem:[#allocation5 + $0x2ac] ss:$16 sps:$4 sm:$0xff]   ;;  %v3133_v38 = vld [vmem:[#allocation5 + $0x6c4] ss:$16 sps:$4 sm:$0xff]  }
  0x95   :  { %1753 = vmatprep.subr.bf16.mxu0 %v3041_v37  ;;  %v3128_v37 = vld [vmem:[#allocation5 + $0x2a8] ss:$16 sps:$4 sm:$0xff]  }
  0x97   :  { %1836 = vmatpush1.bf16.msra.mxu1 %v3042_v40  ;;  %v3131_v40 = vld [vmem:[#allocation5 + $0x6c0] ss:$16 sps:$4 sm:$0xff]  }
  0x98   :  { %1754 = vmatpush1.bf16.msra.mxu0 %v3039_v39  ;;  %1837 = vmatprep.subr.bf16.mxu1 %v3050_v42  ;;  %v3136_v39 = vld [vmem:[#allocation5 + $0x2cc] ss:$16 sps:$4 sm:$0xff]   ;;  %v3139_v42 = vld [vmem:[#allocation5 + $0x6e4] ss:$16 sps:$4 sm:$0xff]  }
  0x99   :  { %1755 = vmatprep.subr.bf16.mxu0 %v3047_v41  ;;  %v3134_v41 = vld [vmem:[#allocation5 + $0x2c8] ss:$16 sps:$4 sm:$0xff]  }
  0x9b   :  { %1838 = vmatpush1.bf16.msra.mxu1 %v3048_v44  ;;  %v3137_v44 = vld [vmem:[#allocation5 + $0x6e0] ss:$16 sps:$4 sm:$0xff]  }
  0x9c   :  { %1756 = vmatpush1.bf16.msra.mxu0 %v3045_v43  ;;  %1839 = vmatprep.subr.bf16.mxu1 %v3056_v46  ;;  %v3142_v43 = vld [vmem:[#allocation5 + $0x2ec] ss:$16 sps:$4 sm:$0xff]   ;;  %v3145_v46 = vld [vmem:[#allocation5 + $0x704] ss:$16 sps:$4 sm:$0xff]  }
  0x9d   :  { %1757 = vmatprep.subr.bf16.mxu0 %v3053_v45  ;;  %v3140_v45 = vld [vmem:[#allocation5 + $0x2e8] ss:$16 sps:$4 sm:$0xff]  }
  0x9f   :  { %1840 = vmatpush1.bf16.msra.mxu1 %v3054_v48  ;;  %v3143_v48 = vld [vmem:[#allocation5 + $0x700] ss:$16 sps:$4 sm:$0xff]  }
  0xa0   :  { %1758 = vmatpush1.bf16.msra.mxu0 %v3051_v47  ;;  %1841 = vmatprep.subr.bf16.mxu1 %v3062_v50  ;;  %v3148_v47 = vld [vmem:[#allocation5 + $0x30c] ss:$16 sps:$4 sm:$0xff]   ;;  %v3151_v50 = vld [vmem:[#allocation5 + $0x724] ss:$16 sps:$4 sm:$0xff]  }
  0xa1   :  { %1759 = vmatprep.subr.bf16.mxu0 %v3059_v49  ;;  %v3146_v49 = vld [vmem:[#allocation5 + $0x308] ss:$16 sps:$4 sm:$0xff]  }
  0xa3   :  { %1842 = vmatpush1.bf16.msra.mxu1 %v3060_v53  ;;  %v3149_v53 = vld [vmem:[#allocation5 + $0x720] ss:$16 sps:$4 sm:$0xff]  }
  0xa4   :  { %1760 = vmatpush1.bf16.msra.mxu0 %v3057_v51  ;;  %1843 = vmatprep.subr.bf16.mxu1 %v3068_v55  ;;  %v3154_v51 = vld [vmem:[#allocation5 + $0x32c] ss:$16 sps:$4 sm:$0xff]   ;;  %v3157_v55 = vld [vmem:[#allocation5 + $0x744] ss:$16 sps:$4 sm:$0xff]  }
  0xa5   :  { %1761 = vmatprep.subr.bf16.mxu0 %v3065_v54  ;;  %v3152_v54 = vld [vmem:[#allocation5 + $0x328] ss:$16 sps:$4 sm:$0xff]  }
  0xa7   :  { %1844 = vmatpush1.bf16.msra.mxu1 %v3066_v57  ;;  %v3155_v57 = vld [vmem:[#allocation5 + $0x740] ss:$16 sps:$4 sm:$0xff]  }
  0xa8   :  { %1762 = vmatpush1.bf16.msra.mxu0 %v3063_v56  ;;  %1845 = vmatprep.subr.bf16.mxu1 %v3074_v59  ;;  %v3160_v56 = vld [vmem:[#allocation5 + $0x34c] ss:$16 sps:$4 sm:$0xff]   ;;  %v3163_v59 = vld [vmem:[#allocation5 + $0x764] ss:$16 sps:$4 sm:$0xff]  }
  0xa9   :  { %1763 = vmatprep.subr.bf16.mxu0 %v3071_v58  ;;  %v3158_v58 = vld [vmem:[#allocation5 + $0x348] ss:$16 sps:$4 sm:$0xff]  }
  0xab   :  { %1846 = vmatpush1.bf16.msra.mxu1 %v3072_v61  ;;  %v3161_v61 = vld [vmem:[#allocation5 + $0x760] ss:$16 sps:$4 sm:$0xff]  }
  0xac   :  { %1764 = vmatpush1.bf16.msra.mxu0 %v3069_v60  ;;  %1847 = vmatprep.subr.bf16.mxu1 %v3080_v63  ;;  %v3166_v60 = vld [vmem:[#allocation5 + $0x36c] ss:$16 sps:$4 sm:$0xff]   ;;  %v3169_v63 = vld [vmem:[#allocation5 + $0x784] ss:$16 sps:$4 sm:$0xff]  }
  0xad   :  { %1765 = vmatprep.subr.bf16.mxu0 %v3077_v62  ;;  %v3164_v62 = vld [vmem:[#allocation5 + $0x368] ss:$16 sps:$4 sm:$0xff]  }
  0xaf   :  { %1848 = vmatpush1.bf16.msra.mxu1 %v3078_v1  ;;  %v3167_v1 = vld [vmem:[#allocation5 + $0x780] ss:$16 sps:$4 sm:$0xff]  }
  0xb0   :  { %1766 = vmatpush1.bf16.msra.mxu0 %v3075_v0  ;;  %1849 = vmatprep.subr.bf16.mxu1 %v3086_v3  ;;  %v3172_v0 = vld [vmem:[#allocation5 + $0x38c] ss:$16 sps:$4 sm:$0xff]   ;;  %v3175_v3 = vld [vmem:[#allocation5 + $0x7a4] ss:$16 sps:$4 sm:$0xff]  }
  0xb1   :  { %1767 = vmatprep.subr.bf16.mxu0 %v3083_v2  ;;  %v3170_v2 = vld [vmem:[#allocation5 + $0x388] ss:$16 sps:$4 sm:$0xff]  }
  0xb3   :  { %1850 = vmatpush1.bf16.msra.mxu1 %v3084_v5  ;;  %v3173_v5 = vld [vmem:[#allocation5 + $0x7a0] ss:$16 sps:$4 sm:$0xff]  }
  0xb4   :  { %1768 = vmatpush1.bf16.msra.mxu0 %v3081_v4  ;;  %1851 = vmatprep.subr.bf16.mxu1 %v3092_v9  ;;  %v3178_v4 = vld [vmem:[#allocation5 + $0x3ac] ss:$16 sps:$4 sm:$0xff]   ;;  %v3181_v9 = vld [vmem:[#allocation5 + $0x7c4] ss:$16 sps:$4 sm:$0xff]  }
  0xb5   :  { %1769 = vmatprep.subr.bf16.mxu0 %v3089_v6  ;;  %v3176_v6 = vld [vmem:[#allocation5 + $0x3a8] ss:$16 sps:$4 sm:$0xff]  }
  0xb7   :  { %1852 = vmatpush1.bf16.msra.mxu1 %v3090_v11  ;;  %v3179_v11 = vld [vmem:[#allocation5 + $0x7c0] ss:$16 sps:$4 sm:$0xff]  }
  0xb8   :  { %1770 = vmatpush1.bf16.msra.mxu0 %v3087_v10  ;;  %1862 = vmatprep.subr.bf16.mxu1 %v3100_v13  ;;  %v3184_v10 = vld [vmem:[#allocation5 + $0x3cc] ss:$16 sps:$4 sm:$0xff]   ;;  %v3187_v13 = vld [vmem:[#allocation5 + $0x7e4] ss:$16 sps:$4 sm:$0xff]  }
  0xb9   :  { %1780 = vmatprep.subr.bf16.mxu0 %v3097_v12  ;;  %v3182_v12 = vld [vmem:[#allocation5 + $0x3c8] ss:$16 sps:$4 sm:$0xff]  }
  0xba   :  { %1854 = vmatmul.mubr.bf16.vlgmr.msra.gmra.mrb[4].mxu1 %v3551_v7  ;;  %v3118_v7 = vld [vmem:[#allocation5 + $0x26c] ss:$16 sps:$4 sm:$0xff]  }
  0xbb   :  { %1772 = vmatmul.mubr.bf16.vlgmr.msra.gmra.mrb[0].mxu0 %v3567_v14  ;;  %1863 = vmatpush1.bf16.msra.mxu1 %v3098_v16  ;;  %v3185_v16 = vld [vmem:[#allocation5 + $0x7e0] ss:$16 sps:$4 sm:$0xff]  }
  0xbc   :  { %1781 = vmatpush1.bf16.msra.mxu0 %v3095_v15  ;;  %1864 = vmatprep.subr.bf16.mxu1 %v3106_v18  ;;  %v3190_v15 = vld [vmem:[#allocation5 + $0x3ec] ss:$16 sps:$4 sm:$0xff]  }
  0xbd   :  { %1782 = vmatprep.subr.bf16.mxu0 %v3103_v17  ;;  %1812 = vmatprep.mubr.bf16.mxu0 %v3573_v20  ;;  %v3188_v17 = vld [vmem:[#allocation5 + $0x3e8] ss:$16 sps:$4 sm:$0xff]   ;;  %v3195_v18 = vld [vmem:[#allocation5 + $0x40c] ss:$16 sps:$4 sm:$0xff]  }
  0xbe   :  { %1894 = vmatprep.mubr.bf16.mxu1 %v3547_v52  ;;  %v3127_v52 = vld [vmem:[#allocation5 + $0x6a4] ss:$16 sps:$4 sm:$0xff]  }
  0xbf   :  { %1865 = vmatpush1.bf16.msra.mxu1 %v3104_v22  ;;  %v3581_v22 = vcombine.low %v3569_v19, %v3569_v19  ;;  %v3292_v19 = vld [vmem:[#allocation7 + $0x10] ss:$8 sps:$4 sm:$0xff]  }
  0xc0   :  { %1783 = vmatpush1.bf16.msra.mxu0 %v3101_v21  ;;  %1866 = vmatprep.subr.bf16.mxu1 %v3112_v24  ;;  %v3193_v21 = vld [vmem:[#allocation5 + $0x408] ss:$16 sps:$4 sm:$0xff]  }
  0xc1   :  { %1784 = vmatprep.subr.bf16.mxu0 %v3109_v23  ;;  %v3198_v23 = vld [vmem:[#allocation5 + $0x42c] ss:$16 sps:$4 sm:$0xff]   ;;  %v3289_v24 = vld [vmem:[#allocation7] ss:$8 sps:$4 sm:$0xff]  }
  0xc3   :  { %1867 = vmatpush1.bf16.msra.mxu1 %v3110_v26  ;;  %v3196_v26 = vld [vmem:[#allocation5 + $0x428] ss:$16 sps:$4 sm:$0xff]  }
  0xc4   :  { %1785 = vmatpush1.bf16.msra.mxu0 %v3107_v25  ;;  %1868 = vmatprep.subr.bf16.mxu1 %v3118_v7  ;;  %v3291_v25 = vld [vmem:[#allocation7 + $0x4] ss:$8 sps:$4 sm:$0xff]  }
  0xc5   :  { %1786 = vmatprep.subr.bf16.mxu0 %v3115_v27  ;;  %v3294_v27 = vld [vmem:[#allocation7 + $0x14] ss:$8 sps:$4 sm:$0xff]  }
  0xc6   :  { %v3201_v7 = vld [vmem:[#allocation5 + $0x44c] ss:$16 sps:$4 sm:$0xff]  }
  0xc7   :  { %1869 = vmatpush1.bf16.msra.mxu1 %v3116_v29  ;;  %v3199_v29 = vld [vmem:[#allocation5 + $0x448] ss:$16 sps:$4 sm:$0xff]  }
  0xc8   :  { %1787 = vmatpush1.bf16.msra.mxu0 %v3113_v28  ;;  %1870 = vmatprep.subr.bf16.mxu1 %v3124_v31  ;;  %v3297_v28 = vld [vmem:[#allocation7 + $0x24] ss:$8 sps:$4 sm:$0xff]   ;;  %v3300_v31 = vld [vmem:[#allocation7 + $0x34] ss:$8 sps:$4 sm:$0xff]  }
  0xc9   :  { %1788 = vmatprep.subr.bf16.mxu0 %v3121_v30  ;;  %v3204_v30 = vld [vmem:[#allocation5 + $0x46c] ss:$16 sps:$4 sm:$0xff]  }
  0xcb   :  { %1871 = vmatpush1.bf16.msra.mxu1 %v3122_v33  ;;  %v3298_v33 = vld [vmem:[#allocation7 + $0x30] ss:$8 sps:$4 sm:$0xff]  }
  0xcc   :  { %1789 = vmatpush1.bf16.msra.mxu0 %v3119_v32  ;;  %1872 = vmatprep.subr.bf16.mxu1 %v3130_v34  ;;  %v3202_v32 = vld [vmem:[#allocation5 + $0x468] ss:$16 sps:$4 sm:$0xff]  }
  0xcd   :  { %1790 = vmatprep.subr.bf16.mxu0 %v3127_v52  ;;  %v3303_v52 = vld [vmem:[#allocation7 + $0x44] ss:$8 sps:$4 sm:$0xff]   ;;  %v3205_v34 = vld [vmem:[#allocation5 + $0x488] ss:$16 sps:$4 sm:$0xff]  }
  0xcf   :  { %1873 = vmatpush1.bf16.msra.mxu1 %v3128_v37  ;;  %v3301_v37 = vld [vmem:[#allocation7 + $0x40] ss:$8 sps:$4 sm:$0xff]  }
  0xd0   :  { %1791 = vmatpush1.bf16.msra.mxu0 %v3125_v36  ;;  %1874 = vmatprep.subr.bf16.mxu1 %v3136_v39  ;;  %v3210_v36 = vld [vmem:[#allocation5 + $0x4ac] ss:$16 sps:$4 sm:$0xff]   ;;  %v3208_v39 = vld [vmem:[#allocation5 + $0x4a8] ss:$16 sps:$4 sm:$0xff]  }
  0xd1   :  { %1792 = vmatprep.subr.bf16.mxu0 %v3133_v38  ;;  %v3306_v38 = vld [vmem:[#allocation7 + $0x54] ss:$8 sps:$4 sm:$0xff]  }
  0xd3   :  { %1875 = vmatpush1.bf16.msra.mxu1 %v3134_v41  ;;  %v3304_v41 = vld [vmem:[#allocation7 + $0x50] ss:$8 sps:$4 sm:$0xff]  }
  0xd4   :  { %1793 = vmatpush1.bf16.msra.mxu0 %v3131_v40  ;;  %1876 = vmatprep.subr.bf16.mxu1 %v3142_v43  ;;  %v3213_v40 = vld [vmem:[#allocation5 + $0x4cc] ss:$16 sps:$4 sm:$0xff]   ;;  %v3211_v43 = vld [vmem:[#allocation5 + $0x4c8] ss:$16 sps:$4 sm:$0xff]  }
  0xd5   :  { %1794 = vmatprep.subr.bf16.mxu0 %v3139_v42  ;;  %v3309_v42 = vld [vmem:[#allocation7 + $0x64] ss:$8 sps:$4 sm:$0xff]  }
  0xd7   :  { %1877 = vmatpush1.bf16.msra.mxu1 %v3140_v45  ;;  %v3307_v45 = vld [vmem:[#allocation7 + $0x60] ss:$8 sps:$4 sm:$0xff]  }
  0xd8   :  { %1795 = vmatpush1.bf16.msra.mxu0 %v3137_v44  ;;  %1878 = vmatprep.subr.bf16.mxu1 %v3148_v47  ;;  %v3216_v44 = vld [vmem:[#allocation5 + $0x4ec] ss:$16 sps:$4 sm:$0xff]   ;;  %v3214_v47 = vld [vmem:[#allocation5 + $0x4e8] ss:$16 sps:$4 sm:$0xff]  }
  0xd9   :  { %1796 = vmatprep.subr.bf16.mxu0 %v3145_v46  ;;  %v3312_v46 = vld [vmem:[#allocation7 + $0x74] ss:$8 sps:$4 sm:$0xff]  }
  0xdb   :  { %1879 = vmatpush1.bf16.msra.mxu1 %v3146_v49  ;;  %v3310_v49 = vld [vmem:[#allocation7 + $0x70] ss:$8 sps:$4 sm:$0xff]  }
  0xdc   :  { %1797 = vmatpush1.bf16.msra.mxu0 %v3143_v48  ;;  %1880 = vmatprep.subr.bf16.mxu1 %v3154_v51  ;;  %v3219_v48 = vld [vmem:[#allocation5 + $0x50c] ss:$16 sps:$4 sm:$0xff]   ;;  %v3217_v51 = vld [vmem:[#allocation5 + $0x508] ss:$16 sps:$4 sm:$0xff]  }
  0xdd   :  { %1798 = vmatprep.subr.bf16.mxu0 %v3151_v50  ;;  %v3315_v50 = vld [vmem:[#allocation7 + $0x84] ss:$8 sps:$4 sm:$0xff]  }
  0xdf   :  { %1881 = vmatpush1.bf16.msra.mxu1 %v3152_v54  ;;  %v3313_v54 = vld [vmem:[#allocation7 + $0x80] ss:$8 sps:$4 sm:$0xff]  }
  0xe0   :  { %1799 = vmatpush1.bf16.msra.mxu0 %v3149_v53  ;;  %1882 = vmatprep.subr.bf16.mxu1 %v3160_v56  ;;  %v3222_v53 = vld [vmem:[#allocation5 + $0x52c] ss:$16 sps:$4 sm:$0xff]   ;;  %v3220_v56 = vld [vmem:[#allocation5 + $0x528] ss:$16 sps:$4 sm:$0xff]  }
  0xe1   :  { %1800 = vmatprep.subr.bf16.mxu0 %v3157_v55  ;;  %v3318_v55 = vld [vmem:[#allocation7 + $0x94] ss:$8 sps:$4 sm:$0xff]  }
  0xe3   :  { %1883 = vmatpush1.bf16.msra.mxu1 %v3158_v58  ;;  %v3316_v58 = vld [vmem:[#allocation7 + $0x90] ss:$8 sps:$4 sm:$0xff]  }
  0xe4   :  { %1801 = vmatpush1.bf16.msra.mxu0 %v3155_v57  ;;  %1884 = vmatprep.subr.bf16.mxu1 %v3166_v60  ;;  %v3225_v57 = vld [vmem:[#allocation5 + $0x54c] ss:$16 sps:$4 sm:$0xff]   ;;  %v3223_v60 = vld [vmem:[#allocation5 + $0x548] ss:$16 sps:$4 sm:$0xff]  }
  0xe5   :  { %1802 = vmatprep.subr.bf16.mxu0 %v3163_v59  ;;  %v3321_v59 = vld [vmem:[#allocation7 + $0xa4] ss:$8 sps:$4 sm:$0xff]  }
  0xe7   :  { %1885 = vmatpush1.bf16.msra.mxu1 %v3164_v62  ;;  %v3319_v62 = vld [vmem:[#allocation7 + $0xa0] ss:$8 sps:$4 sm:$0xff]  }
  0xe8   :  { %1803 = vmatpush1.bf16.msra.mxu0 %v3161_v61  ;;  %1886 = vmatprep.subr.bf16.mxu1 %v3172_v0  ;;  %v3228_v61 = vld [vmem:[#allocation5 + $0x56c] ss:$16 sps:$4 sm:$0xff]   ;;  %v3226_v0 = vld [vmem:[#allocation5 + $0x568] ss:$16 sps:$4 sm:$0xff]  }
  0xe9   :  { %1804 = vmatprep.subr.bf16.mxu0 %v3169_v63  ;;  %v3324_v63 = vld [vmem:[#allocation7 + $0xb4] ss:$8 sps:$4 sm:$0xff]  }
  0xeb   :  { %1887 = vmatpush1.bf16.msra.mxu1 %v3170_v2  ;;  %v3322_v2 = vld [vmem:[#allocation7 + $0xb0] ss:$8 sps:$4 sm:$0xff]  }
  0xec   :  { %1805 = vmatpush1.bf16.msra.mxu0 %v3167_v1  ;;  %1888 = vmatprep.subr.bf16.mxu1 %v3178_v4  ;;  %v3231_v1 = vld [vmem:[#allocation5 + $0x58c] ss:$16 sps:$4 sm:$0xff]   ;;  %v3229_v4 = vld [vmem:[#allocation5 + $0x588] ss:$16 sps:$4 sm:$0xff]  }
  0xed   :  { %1806 = vmatprep.subr.bf16.mxu0 %v3175_v3  ;;  %v3327_v3 = vld [vmem:[#allocation7 + $0xc4] ss:$8 sps:$4 sm:$0xff]  }
  0xef   :  { %1889 = vmatpush1.bf16.msra.mxu1 %v3176_v6  ;;  %v3325_v6 = vld [vmem:[#allocation7 + $0xc0] ss:$8 sps:$4 sm:$0xff]  }
  0xf0   :  { %1807 = vmatpush1.bf16.msra.mxu0 %v3173_v5  ;;  %1890 = vmatprep.subr.bf16.mxu1 %v3184_v10  ;;  %v3234_v5 = vld [vmem:[#allocation5 + $0x5ac] ss:$16 sps:$4 sm:$0xff]   ;;  %v3232_v10 = vld [vmem:[#allocation5 + $0x5a8] ss:$16 sps:$4 sm:$0xff]  }
  0xf1   :  { %1808 = vmatprep.subr.bf16.mxu0 %v3181_v9  ;;  %v3330_v9 = vld [vmem:[#allocation7 + $0xd4] ss:$8 sps:$4 sm:$0xff]  }
  0xf3   :  { %1891 = vmatpush1.bf16.msra.mxu1 %v3182_v12  ;;  %v3328_v12 = vld [vmem:[#allocation7 + $0xd0] ss:$8 sps:$4 sm:$0xff]  }
  0xf4   :  { %1809 = vmatpush1.bf16.msra.mxu0 %v3179_v11  ;;  %1892 = vmatprep.subr.bf16.mxu1 %v3190_v15  ;;  %v3237_v11 = vld [vmem:[#allocation5 + $0x5cc] ss:$16 sps:$4 sm:$0xff]  }
  0xf5   :  { %1810 = vmatprep.subr.bf16.mxu0 %v3187_v13  ;;  %v3235_v13 = vld [vmem:[#allocation5 + $0x5c8] ss:$16 sps:$4 sm:$0xff]   ;;  %v3240_v15 = vld [vmem:[#allocation5 + $0x5ec] ss:$16 sps:$4 sm:$0xff]  }
  0xf7   :  { %1893 = vmatpush1.bf16.msra.mxu1 %v3188_v17  ;;  %v3243_v17 = vld [vmem:[#allocation5 + $0x60c] ss:$16 sps:$4 sm:$0xff]  }
  0xf8   :  { %1811 = vmatpush1.bf16.msra.mxu0 %v3185_v16  ;;  %1903 = vmatprep.subr.bf16.mxu1 %v3195_v18  ;;  %v3238_v16 = vld [vmem:[#allocation5 + $0x5e8] ss:$16 sps:$4 sm:$0xff]  }
  0xf9   :  { %2397 = vmatprep.subr.bf16.mxu0 %v3291_v25  ;;  %v3241_v18 = vld [vmem:[#allocation5 + $0x608] ss:$16 sps:$4 sm:$0xff]  }
  0xfa   :  { %1895 = vmatmul.mubr.bf16.vlgmr.msra.gmra.mrb[4].mxu1 %v3553_v8  ;;  %v3295_v8 = vld [vmem:[#allocation7 + $0x20] ss:$8 sps:$4 sm:$0xff]  }
  0xfb   :  { %1813 = vmatmul.mubr.bf16.vlgmr.msra.gmra.mrb[0].mxu0 %v3581_v22  ;;  %1904 = vmatpush1.bf16.msra.mxu1 %v3193_v21  ;;  %v3246_v21 = vld [vmem:[#allocation5 + $0x62c] ss:$16 sps:$4 sm:$0xff]   ;;  %v3247_v25 = vld [vmem:[#allocation5 + $0x648] ss:$16 sps:$4 sm:$0xff]  }
  0xfc   :  { %1935 = vmatprep.mubr.bf16.mxu1 %v3562_v35  ;;  %1905 = vmatprep.subr.bf16.mxu1 %v3198_v23  ;;  %v3207_v35 = vld [vmem:[#allocation5 + $0x48c] ss:$16 sps:$4 sm:$0xff]   ;;  %v3244_v23 = vld [vmem:[#allocation5 + $0x628] ss:$16 sps:$4 sm:$0xff]  }
  0xfd   :  { %2398 = vmatpush1.bf16.msra.mxu0 %v3289_v24  ;;  %v3249_v24 = vld [vmem:[#allocation5 + $0x64c] ss:$16 sps:$4 sm:$0xff]  }
  0xfe   :  { %2399 = vmatprep.subr.bf16.mxu0 %v3294_v27  ;;  %v3250_v27 = vld [vmem:[#allocation5 + $0x668] ss:$16 sps:$4 sm:$0xff]  }
  0xff   :  { %1906 = vmatpush1.bf16.msra.mxu1 %v3196_v26  ;;  %v3252_v26 = vld [vmem:[#allocation5 + $0x66c] ss:$16 sps:$4 sm:$0xff]  }
 0x100   :  { %1907 = vmatprep.subr.bf16.mxu1 %v3201_v7  ;;  %v3255_v7 = vld [vmem:[#allocation5 + $0x68c] ss:$16 sps:$4 sm:$0xff]  }
 0x101   :  { %2400 = vmatpush1.bf16.msra.mxu0 %v3292_v19  ;;  %v3253_v19 = vld [vmem:[#allocation5 + $0x688] ss:$16 sps:$4 sm:$0xff]  }
 0x102   :  { %2401 = vmatprep.subr.bf16.mxu0 %v3297_v28  ;;  %v3258_v28 = vld [vmem:[#allocation5 + $0x6ac] ss:$16 sps:$4 sm:$0xff]  }
 0x103   :  { %1908 = vmatpush1.bf16.msra.mxu1 %v3199_v29  ;;  %v3261_v29 = vld [vmem:[#allocation5 + $0x6cc] ss:$16 sps:$4 sm:$0xff]  }
 0x104   :  { %1909 = vmatprep.subr.bf16.mxu1 %v3204_v30 }
 0x105   :  { %2402 = vmatpush1.bf16.msra.mxu0 %v3295_v8 }
 0x106   :  { %2403 = vmatprep.subr.bf16.mxu0 %v3300_v31  ;;  %v3331_v31 = vld [vmem:[#allocation7 + $0xe0] ss:$8 sps:$4 sm:$0xff]  }
 0x107   :  { %1910 = vmatpush1.bf16.msra.mxu1 %v3202_v32 }
 0x108   :  { %1911 = vmatprep.subr.bf16.mxu1 %v3207_v35  ;;  %v3259_v35 = vld [vmem:[#allocation5 + $0x6c8] ss:$16 sps:$4 sm:$0xff]  }
 0x109   :  { %2404 = vmatpush1.bf16.msra.mxu0 %v3298_v33 }
 0x10a   :  { %2405 = vmatprep.subr.bf16.mxu0 %v3303_v52  ;;  %v3264_v52 = vld [vmem:[#allocation5 + $0x6ec] ss:$16 sps:$4 sm:$0xff]  }
 0x10b   :  { %1912 = vmatpush1.bf16.msra.mxu1 %v3205_v34  ;;  %v3336_v34 = vld [vmem:[#allocation7 + $0xf4] ss:$8 sps:$4 sm:$0xff]  }
 0x10c   :  { %1913 = vmatprep.subr.bf16.mxu1 %v3210_v36  ;;  %v3334_v36 = vld [vmem:[#allocation7 + $0xf0] ss:$8 sps:$4 sm:$0xff]  }
 0x10d   :  { %2406 = vmatpush1.bf16.msra.mxu0 %v3301_v37  ;;  %v3262_v37 = vld [vmem:[#allocation5 + $0x6e8] ss:$16 sps:$4 sm:$0xff]  }
 0x10e   :  { %2407 = vmatprep.subr.bf16.mxu0 %v3306_v38  ;;  %v3267_v38 = vld [vmem:[#allocation5 + $0x70c] ss:$16 sps:$4 sm:$0xff]  }
 0x10f   :  { %1914 = vmatpush1.bf16.msra.mxu1 %v3208_v39  ;;  %v3265_v39 = vld [vmem:[#allocation5 + $0x708] ss:$16 sps:$4 sm:$0xff]  }
 0x110   :  { %1915 = vmatprep.subr.bf16.mxu1 %v3213_v40  ;;  %v3339_v40 = vld [vmem:[#allocation7 + $0x104] ss:$8 sps:$4 sm:$0xff]  }
 0x111   :  { %2408 = vmatpush1.bf16.msra.mxu0 %v3304_v41  ;;  %v3270_v41 = vld [vmem:[#allocation5 + $0x72c] ss:$16 sps:$4 sm:$0xff]  }
 0x112   :  { %2409 = vmatprep.subr.bf16.mxu0 %v3309_v42  ;;  %v3268_v42 = vld [vmem:[#allocation5 + $0x728] ss:$16 sps:$4 sm:$0xff]  }
 0x113   :  { %1916 = vmatpush1.bf16.msra.mxu1 %v3211_v43  ;;  %v3273_v43 = vld [vmem:[#allocation5 + $0x74c] ss:$16 sps:$4 sm:$0xff]  }
 0x114   :  { %1917 = vmatprep.subr.bf16.mxu1 %v3216_v44  ;;  %v3271_v44 = vld [vmem:[#allocation5 + $0x748] ss:$16 sps:$4 sm:$0xff]  }
 0x115   :  { %2410 = vmatpush1.bf16.msra.mxu0 %v3307_v45  ;;  %v3276_v45 = vld [vmem:[#allocation5 + $0x76c] ss:$16 sps:$4 sm:$0xff]  }
 0x116   :  { %2411 = vmatprep.subr.bf16.mxu0 %v3312_v46  ;;  %v3274_v46 = vld [vmem:[#allocation5 + $0x768] ss:$16 sps:$4 sm:$0xff]  }
 0x117   :  { %1918 = vmatpush1.bf16.msra.mxu1 %v3214_v47  ;;  %v3279_v47 = vld [vmem:[#allocation5 + $0x78c] ss:$16 sps:$4 sm:$0xff]  }
 0x118   :  { %1919 = vmatprep.subr.bf16.mxu1 %v3219_v48  ;;  %v3277_v48 = vld [vmem:[#allocation5 + $0x788] ss:$16 sps:$4 sm:$0xff]  }
 0x119   :  { %2412 = vmatpush1.bf16.msra.mxu0 %v3310_v49  ;;  %v3282_v49 = vld [vmem:[#allocation5 + $0x7ac] ss:$16 sps:$4 sm:$0xff]  }
 0x11a   :  { %2413 = vmatprep.subr.bf16.mxu0 %v3315_v50  ;;  %v3280_v50 = vld [vmem:[#allocation5 + $0x7a8] ss:$16 sps:$4 sm:$0xff]  }
 0x11b   :  { %1920 = vmatpush1.bf16.msra.mxu1 %v3217_v51  ;;  %v3285_v51 = vld [vmem:[#allocation5 + $0x7cc] ss:$16 sps:$4 sm:$0xff]  }
 0x11c   :  { %1921 = vmatprep.subr.bf16.mxu1 %v3222_v53  ;;  %v3283_v53 = vld [vmem:[#allocation5 + $0x7c8] ss:$16 sps:$4 sm:$0xff]  }
 0x11d   :  { %2414 = vmatpush1.bf16.msra.mxu0 %v3313_v54  ;;  %v3288_v54 = vld [vmem:[#allocation5 + $0x7ec] ss:$16 sps:$4 sm:$0xff]  }
 0x11e   :  { %2415 = vmatprep.subr.bf16.mxu0 %v3318_v55  ;;  %v3286_v55 = vld [vmem:[#allocation5 + $0x7e8] ss:$16 sps:$4 sm:$0xff]  }
 0x11f   :  { %1922 = vmatpush1.bf16.msra.mxu1 %v3220_v56  ;;  %v329_v56 = vlaneseq }
 0x120   :  { %1923 = vmatprep.subr.bf16.mxu1 %v3225_v57 }
 0x121   :  { %2416 = vmatpush1.bf16.msra.mxu0 %v3316_v58  ;;  %v3589_v57 = vshrl.u32 %v329_v56, 7 }
 0x122   :  { %2417 = vmatprep.subr.bf16.mxu0 %v3321_v59  ;;  %v3597_v59 = vld [vmem:[%s3626_s2] sm:$0xf] }
 0x123   :  { %1924 = vmatpush1.bf16.msra.mxu1 %v3223_v60  ;;  %v3592_v58 = vsub.s32 0, %v3589_v57  ;;  %v335_v60 = vsub.s32 1, %v3589_v57 }
 0x124   :  { %1925 = vmatprep.subr.bf16.mxu1 %v3228_v61 }
 0x125   :  { %2418 = vmatpush1.bf16.msra.mxu0 %v3319_v62  ;;  %v332_v61 = vrot.slane %v3597_v59, %v3592_v58 }
 0x126   :  { %2419 = vmatprep.subr.bf16.mxu0 %v3324_v63 }
 0x127   :  { %1926 = vmatpush1.bf16.msra.mxu1 %v3226_v0 }
 0x128   :  { %1927 = vmatprep.subr.bf16.mxu1 %v3231_v1 }
 0x129   :  { %2420 = vmatpush1.bf16.msra.mxu0 %v3322_v2 }
 0x12a   :  { %2421 = vmatprep.subr.bf16.mxu0 %v3327_v3 }
 0x12b   :  { %1928 = vmatpush1.bf16.msra.mxu1 %v3229_v4 }
 0x12c   :  { %1929 = vmatprep.subr.bf16.mxu1 %v3234_v5 }
 0x12d   :  { %2422 = vmatpush1.bf16.msra.mxu0 %v3325_v6 }
 0x12e   :  { %2423 = vmatprep.subr.bf16.mxu0 %v3330_v9 }
 0x12f   :  { %1930 = vmatpush1.bf16.msra.mxu1 %v3232_v10 }
 0x130   :  { %1931 = vmatprep.subr.bf16.mxu1 %v3237_v11 }
 0x131   :  { %2424 = vmatpush1.bf16.msra.mxu0 %v3328_v12 }
 0x133   :  { %1932 = vmatpush1.bf16.msra.mxu1 %v3235_v13  ;;  %v3337_v13 = vld [vmem:[#allocation7 + $0x100] ss:$8 sps:$4 sm:$0xff]  }
 0x134   :  { %1933 = vmatprep.subr.bf16.mxu1 %v3240_v15 }
 0x137   :  { %1934 = vmatpush1.bf16.msra.mxu1 %v3238_v16  ;;  %v3342_v16 = vld [vmem:[#allocation7 + $0x114] ss:$8 sps:$4 sm:$0xff]  }
 0x138   :  { %1944 = vmatprep.subr.bf16.mxu1 %v3243_v17  ;;  %v3340_v17 = vld [vmem:[#allocation7 + $0x110] ss:$8 sps:$4 sm:$0xff]  }
 0x13a   :  { %1936 = vmatmul.mubr.bf16.vlgmr.msra.gmra.mrb[4].mxu1 %v3567_v14  ;;  %v3256_v14 = vld [vmem:[#allocation5 + $0x6a8] ss:$16 sps:$4 sm:$0xff]  }
 0x13b   :  { %1945 = vmatpush1.bf16.msra.mxu1 %v3241_v18  ;;  %1976 = vmatprep.mubr.bf16.mxu1 %v3573_v20  ;;  %v3333_v20 = vld [vmem:[#allocation7 + $0xe4] ss:$8 sps:$4 sm:$0xff]  }
 0x13c   :  { %1946 = vmatprep.subr.bf16.mxu1 %v3246_v21  ;;  %2425 = vmatprep.subr.bf16.mxu0 %v3333_v20  ;;  %v3345_v18 = vld [vmem:[#allocation7 + $0x124] ss:$8 sps:$4 sm:$0xff]   ;;  %v3343_v21 = vld [vmem:[#allocation7 + $0x120] ss:$8 sps:$4 sm:$0xff]  }
 0x13d   :  { %2426 = vmatpush1.bf16.msra.mxu0 %v3331_v31  ;;  %v3361_v20 = vld [vmem:[#allocation7 + $0x180] ss:$8 sps:$4 sm:$0xff]   ;;  %v3364_v31 = vld [vmem:[#allocation7 + $0x190] ss:$8 sps:$4 sm:$0xff]  }
 0x13e   :  { %2427 = vmatprep.subr.bf16.mxu0 %v3336_v34  ;;  %v3375_v34 = vld [vmem:[#allocation7 + $0x1c4] ss:$8 sps:$4 sm:$0xff]  }
 0x13f   :  { %1947 = vmatpush1.bf16.msra.mxu1 %v3244_v23  ;;  %v3348_v23 = vld [vmem:[#allocation7 + $0x134] ss:$8 sps:$4 sm:$0xff]  }
 0x140   :  { %1948 = vmatprep.subr.bf16.mxu1 %v3249_v24  ;;  %v3346_v24 = vld [vmem:[#allocation7 + $0x130] ss:$8 sps:$4 sm:$0xff]  }
 0x141   :  { %2428 = vmatpush1.bf16.msra.mxu0 %v3334_v36  ;;  %v3373_v36 = vld [vmem:[#allocation7 + $0x1c0] ss:$8 sps:$4 sm:$0xff]  }
 0x142   :  { %2438 = vmatprep.subr.bf16.mxu0 %v3339_v40  ;;  %v3379_v40 = vld [vmem:[#allocation7 + $0x1e0] ss:$8 sps:$4 sm:$0xff]  }
 0x143   :  { %1949 = vmatpush1.bf16.msra.mxu1 %v3247_v25  ;;  %v3351_v25 = vld [vmem:[#allocation7 + $0x144] ss:$8 sps:$4 sm:$0xff]  }
 0x144   :  { %1950 = vmatprep.subr.bf16.mxu1 %v3252_v26  ;;  %v3349_v26 = vld [vmem:[#allocation7 + $0x140] ss:$8 sps:$4 sm:$0xff]  }
 0x147   :  { %1951 = vmatpush1.bf16.msra.mxu1 %v3250_v27  ;;  %v3354_v27 = vld [vmem:[#allocation7 + $0x154] ss:$8 sps:$4 sm:$0xff]  }
 0x148   :  { %1952 = vmatprep.subr.bf16.mxu1 %v3255_v7  ;;  %v3352_v7 = vld [vmem:[#allocation7 + $0x150] ss:$8 sps:$4 sm:$0xff]  }
 0x14b   :  { %1953 = vmatpush1.bf16.msra.mxu1 %v3253_v19  ;;  %v3357_v19 = vld [vmem:[#allocation7 + $0x164] ss:$8 sps:$4 sm:$0xff]  }
 0x14c   :  { %1954 = vmatprep.subr.bf16.mxu1 %v3258_v28  ;;  %v3355_v28 = vld [vmem:[#allocation7 + $0x160] ss:$8 sps:$4 sm:$0xff]  }
 0x14d   :  { %v1691_v30 = vpop.f32.mrb[0].mxu1 }
 0x14e   :  { %v1693_v8 = vpop.f32.mrb[1].mxu1  ;;  %v1692_v62 = vadd.f32 %v1691_v30, %v332_v61  ;;  %v3363_v30 = vld [vmem:[#allocation7 + $0x184] ss:$8 sps:$4 sm:$0xff]  }
 0x14f   :  { %v1695_v32 = vpop.f32.mrb[2].mxu1  ;;  %1955 = vmatpush1.bf16.msra.mxu1 %v3256_v14  ;;  %v3360_v14 = vld [vmem:[#allocation7 + $0x174] ss:$8 sps:$4 sm:$0xff]  }
 0x150   :  { %v1696_v33 = vpop.f32.mrb[3].mxu1  ;;  %1956 = vmatprep.subr.bf16.mxu1 %v3261_v29  ;;  %v3358_v29 = vld [vmem:[#allocation7 + $0x170] ss:$8 sps:$4 sm:$0xff]   ;;  %v3369_v32 = vld [vmem:[#allocation7 + $0x1a4] ss:$8 sps:$4 sm:$0xff]  }
 0x151   :  { %v3372_v33 = vld [vmem:[#allocation7 + $0x1b4] ss:$8 sps:$4 sm:$0xff]  }
 0x153   :  { %1957 = vmatpush1.bf16.msra.mxu1 %v3259_v35  ;;  %v3367_v35 = vld [vmem:[#allocation7 + $0x1a0] ss:$8 sps:$4 sm:$0xff]  }
 0x154   :  { %1958 = vmatprep.subr.bf16.mxu1 %v3264_v52  ;;  %v3370_v52 = vld [vmem:[#allocation7 + $0x1b0] ss:$8 sps:$4 sm:$0xff]  }
 0x157   :  { %1959 = vmatpush1.bf16.msra.mxu1 %v3262_v37  ;;  %v3378_v37 = vld [vmem:[#allocation7 + $0x1d4] ss:$8 sps:$4 sm:$0xff]  }
 0x158   :  { %1960 = vmatprep.subr.bf16.mxu1 %v3267_v38  ;;  %v3376_v38 = vld [vmem:[#allocation7 + $0x1d0] ss:$8 sps:$4 sm:$0xff]  }
 0x15b   :  { %1961 = vmatpush1.bf16.msra.mxu1 %v3265_v39  ;;  %v3381_v39 = vld [vmem:[#allocation7 + $0x1e4] ss:$8 sps:$4 sm:$0xff]  }
 0x15c   :  { %1962 = vmatprep.subr.bf16.mxu1 %v3270_v41  ;;  %v3384_v41 = vld [vmem:[#allocation7 + $0x1f4] ss:$8 sps:$4 sm:$0xff]  }
 0x15f   :  { %1963 = vmatpush1.bf16.msra.mxu1 %v3268_v42  ;;  %v3382_v42 = vld [vmem:[#allocation7 + $0x1f0] ss:$8 sps:$4 sm:$0xff]  }
 0x160   :  { %1964 = vmatprep.subr.bf16.mxu1 %v3273_v43  ;;  %v339_v43 = vsub.s32 2, %v3589_v57 }
 0x163   :  { %1965 = vmatpush1.bf16.msra.mxu1 %v3271_v44  ;;  %v343_v44 = vsub.s32 3, %v3589_v57 }
 0x164   :  { %1966 = vmatprep.subr.bf16.mxu1 %v3276_v45  ;;  %v340_v45 = vrot.slane %v3597_v59, %v339_v43 }
 0x167   :  { %1967 = vmatpush1.bf16.msra.mxu1 %v3274_v46  ;;  %v344_v46 = vrot.slane %v3597_v59, %v343_v44 }
 0x168   :  { %1968 = vmatprep.subr.bf16.mxu1 %v3279_v47 }
 0x16b   :  { %1969 = vmatpush1.bf16.msra.mxu1 %v3277_v48 }
 0x16c   :  { %1970 = vmatprep.subr.bf16.mxu1 %v3282_v49 }
 0x16f   :  { %1971 = vmatpush1.bf16.msra.mxu1 %v3280_v50 }
 0x170   :  { %1972 = vmatprep.subr.bf16.mxu1 %v3285_v51 }
 0x173   :  { %1973 = vmatpush1.bf16.msra.mxu1 %v3283_v53 }
 0x174   :  { %1974 = vmatprep.subr.bf16.mxu1 %v3288_v54 }
 0x177   :  { %1975 = vmatpush1.bf16.msra.mxu1 %v3286_v55 }
 0x17a   :  { %1977 = vmatmul.mubr.bf16.vlgmr.msra.gmra.mrb[4].mxu1 %v3581_v22  ;;  %v336_v22 = vrot.slane %v3597_v59, %v335_v60  ;;  %v2485_v59 = vld [vmem:[%s3629_s5] sm:$0x3] }
 0x17c   :  { %v1694_v63 = vadd.f32 %v1693_v8, %v336_v22  ;;  %v3366_v8 = vld [vmem:[#allocation7 + $0x194] ss:$8 sps:$4 sm:$0xff]  }
 0x1ce   :  { %v1814_v0 = vpop.f32.mrb[0].mxu0 }
 0x1cf   :  { %v2857_v1 = vadd.f32 %v1814_v0, %v1692_v62  ;;  %v1816_v2 = vpop.f32.mrb[1].mxu0  ;;  %v2065_v0 = vld [vmem:[%s3628_s4] sm:$0x3] }
 0x1d0   :  { %v2859_v3 = vadd.f32 %v1816_v2, %v1694_v63  ;;  %v1818_v4 = vpop.f32.mrb[2].mxu0  ;;  %v2511_v63 = vld [vmem:[#allocation2] sm:$0x1]  ;;  %v2070_v2 = vrot.slane %v2065_v0, %v3592_v58 }
 0x1d1   :  { %vm1985_vm0 = vcmp.gt.f32.partialorder %v2857_v1, 0.0  ;;  %v1989_v5 = vmul.f32 0.2, %v2857_v1  ;;  %v1819_v6 = vpop.f32.mrb[3].mxu0  ;;  %2888 = vpush %v2511_v63 }
 0x1d2   :  { %vm1986_vm1 = vcmp.gt.f32.partialorder %v2859_v3, 0.0  ;;  %v1990_v9 = vmul.f32 0.2, %v2859_v3 }
 0x1d3   :  { %v1993_v10 = vsel %vm1985_vm0, %v2857_v1, %v1989_v5  ;;  %v2486_v1 = vunpack.c.l.bf16 %v2485_v59 }
 0x1d4   :  { %v1994_v11 = vsel %vm1986_vm1, %v2859_v3, %v1990_v9  ;;  %v1997_v15 = vpack.c.bf16 %v1993_v10, %v1993_v10  ;;  %v2074_v3 = vrot.slane %v2065_v0, %v335_v60 }
 0x1d5   :  { %v1998_v12 = vpack.c.bf16 %v1994_v11, %v1994_v11  ;;  %v2491_v4 = vrot.slane %v2486_v1, %v3592_v58  ;;  %v2495_v5 = vrot.slane %v2486_v1, %v339_v43 }
 0x1d7   :  { %2429 = vmatprep.mubr.bf16.mxu0 %v1998_v12 }
 0x1d8   :  { %2430 = vmatmul.mubr.bf16.vlgmr.msra.gmra.mrb[4].mxu0 %v1997_v15 }
 0x1d9   :  { %2439 = vmatpush1.bf16.msra.mxu0 %v3337_v13  ;;  %v2501_v13 = vrot.slane %v2491_v4, %v3592_v58 }
 0x1da   :  { %2440 = vmatprep.subr.bf16.mxu0 %v3342_v16 }
 0x1dd   :  { %2441 = vmatpush1.bf16.msra.mxu0 %v3340_v17  ;;  %v2505_v17 = vrot.slane %v2495_v5, %v3592_v58 }
 0x1de   :  { %2442 = vmatprep.subr.bf16.mxu0 %v3345_v18 }
 0x1e1   :  { %2443 = vmatpush1.bf16.msra.mxu0 %v3343_v21 }
 0x1e2   :  { %2444 = vmatprep.subr.bf16.mxu0 %v3348_v23 }
 0x1e5   :  { %2445 = vmatpush1.bf16.msra.mxu0 %v3346_v24 }
 0x1e6   :  { %2446 = vmatprep.subr.bf16.mxu0 %v3351_v25 }
 0x1e9   :  { %2447 = vmatpush1.bf16.msra.mxu0 %v3349_v26 }
 0x1ea   :  { %2448 = vmatprep.subr.bf16.mxu0 %v3354_v27 }
 0x1ed   :  { %2449 = vmatpush1.bf16.msra.mxu0 %v3352_v7 }
 0x1ee   :  { %2450 = vmatprep.subr.bf16.mxu0 %v3357_v19 }
 0x1f1   :  { %2451 = vmatpush1.bf16.msra.mxu0 %v3355_v28 }
 0x1f2   :  { %2452 = vmatprep.subr.bf16.mxu0 %v3360_v14 }
 0x1f5   :  { %2453 = vmatpush1.bf16.msra.mxu0 %v3358_v29 }
 0x1f6   :  { %2454 = vmatprep.subr.bf16.mxu0 %v3363_v30 }
 0x1f9   :  { %2455 = vmatpush1.bf16.msra.mxu0 %v3361_v20 }
 0x1fa   :  { %2456 = vmatprep.subr.bf16.mxu0 %v3366_v8 }
 0x1fd   :  { %2457 = vmatpush1.bf16.msra.mxu0 %v3364_v31 }
 0x1fe   :  { %2458 = vmatprep.subr.bf16.mxu0 %v3369_v32 }
 0x201   :  { %2459 = vmatpush1.bf16.msra.mxu0 %v3367_v35 }
 0x202   :  { %2460 = vmatprep.subr.bf16.mxu0 %v3372_v33  ;;  %s2889_s4 = spop %2888 }
 0x203   :  { %v2513_v25 = vstv %s2889_s4 }
 0x205   :  { %2461 = vmatpush1.bf16.msra.mxu0 %v3370_v52 }
 0x206   :  { %2462 = vmatprep.subr.bf16.mxu0 %v3375_v34 }
 0x209   :  { %2463 = vmatpush1.bf16.msra.mxu0 %v3373_v36 }
 0x20a   :  { %2464 = vmatprep.subr.bf16.mxu0 %v3378_v37 }
 0x20d   :  { %2465 = vmatpush1.bf16.msra.mxu0 %v3376_v38 }
 0x20e   :  { %2466 = vmatprep.subr.bf16.mxu0 %v3381_v39 }
 0x211   :  { %2467 = vmatpush1.bf16.msra.mxu0 %v3379_v40 }
 0x212   :  { %2468 = vmatprep.subr.bf16.mxu0 %v3384_v41 }
 0x215   :  { %2469 = vmatpush1.bf16.msra.mxu0 %v3382_v42 }
 0x24d   :  { %v1978_v47 = vpop.f32.mrb[4].mxu1 }
 0x24e   :  { %v2860_v48 = vadd.f32 %v1978_v47, %v340_v45  ;;  %v1980_v49 = vpop.f32.mrb[5].mxu1 }
 0x24f   :  { %v2861_v50 = vadd.f32 %v1980_v49, %v344_v46  ;;  %v1982_v51 = vpop.f32.mrb[6].mxu1 }
 0x250   :  { %vm1987_vm2 = vcmp.gt.f32.partialorder %v2860_v48, 0.0  ;;  %v1991_v53 = vmul.f32 0.2, %v2860_v48  ;;  %v1983_v54 = vpop.f32.mrb[7].mxu1 }
 0x251   :  { %vm1988_vm3 = vcmp.gt.f32.partialorder %v2861_v50, 0.0  ;;  %v1992_v55 = vmul.f32 0.2, %v2861_v50 }
 0x252   :  { %v1995_v56 = vsel %vm1987_vm2, %v2860_v48, %v1991_v53 }
 0x253   :  { %v1996_v61 = vsel %vm1988_vm3, %v2861_v50, %v1992_v55  ;;  %v1999_v62 = vpack.c.bf16 %v1995_v56, %v1995_v56 }
 0x254   :  { %v2000_v22 = vpack.c.bf16 %v1996_v61, %v1996_v61 }
 0x256   :  { %2470 = vmatprep.mubr.bf16.mxu0 %v2000_v22 }
 0x257   :  { %2471 = vmatmul.mubr.bf16.vlgmr.msra.gmra.mrb[4].mxu0 %v1999_v62 }
 0x32a   :  { %v2472_v6 = vpop.f32.mrb[4].mxu0 }
 0x32b   :  { %v2862_v9 = vadd.f32 %v2472_v6, %v2070_v2  ;;  %v2474_v10 = vpop.f32.mrb[5].mxu0 }
 0x32c   :  { %v2863_v11 = vadd.f32 %v2474_v10, %v2074_v3  ;;  %v2476_v12 = vpop.f32.mrb[6].mxu0 }
 0x32d   :  { %vm2479_vm4 = vcmp.gt.f32.partialorder %v2862_v9, 0.0  ;;  %v2481_v15 = vmul.f32 0.2, %v2862_v9  ;;  %v2477_v16 = vpop.f32.mrb[7].mxu0 }
 0x32e   :  { %vm2480_vm5 = vcmp.gt.f32.partialorder %v2863_v11, 0.0  ;;  %v2482_v18 = vmul.f32 0.2, %v2863_v11 }
 0x32f   :  { %v2483_v21 = vsel %vm2479_vm4, %v2862_v9, %v2481_v15 }
 0x330   :  { %v2484_v57 = vsel %vm2480_vm5, %v2863_v11, %v2482_v18  ;;  %v2506_v60 = vmul.f32 %v2501_v13, %v2483_v21 }
 0x331   :  { %v2507_v23 = vmul.f32 %v2505_v17, %v2484_v57 }
 0x333   :  { %v2508_v24 = vadd.f32 %v2507_v23, %v2506_v60 }
 0x335   :  { %2509 = vadd.xlane.f32.xlu0 %v2508_v24 }
 0x3c2   :  { %v2510_v26 = vpop.xlane.xlu0 %2509 }
 0x3c3   :  { %v2514_v27 = vadd.f32 %v2513_v25, %v2510_v26 }
 0x3c5   :  { %v2515_v7 = vsub.f32 0.0, %v2514_v27 }
 0x3c7   :  { %v2516_v19 = vmul.f32 1.442695, %v2515_v7 }
 0x3c9   :  { %3385 = vpow2.f32 %v2516_v19 }
 0x3d3   :  { %v3386_v28 = vpop.eup %3385 }
 0x3d4   :  { %v2518_v14 = vadd.f32 1.0, %v3386_v28 }
 0x3d6   :  { %3387 = vrcp.f32 %v2518_v14 }
 0x3e0   :  { %v3388_v58 = vpop.eup %3387 }
 0x3e1   :  { %2521 = vst.msk [vmem:[%s3631_s7] sm:$0xff] %vm2520_vm6, %v3388_v58 }
 0x3e2   :  { %2526 = vsyncpa [#allocation4], 1 }
 0x3e3   :  { %2527 = vsyncpa [#allocation6], 1 }

</bundles_post_ra>
